<compile_context>
chip_gen: v5e
topology: v5e:2x2
jax: 0.10.0
libtpu: 0.0.40
codegen_flags: <defaults>
</compile_context>

<pallas_src>
import functools

import jax
import jax.numpy as jnp
from jax.experimental import pallas as pl
from jax.experimental.pallas import tpu as pltpu

LN_EPS = 1e-5                       # torch nn.LayerNorm default
_VMEM_LIMIT = 48 * 1024 * 1024      # > 16/32 MiB defaults, fits v7x's 64 MiB


def _divisor_tile(n, target, align):
  """Largest multiple of `align` <= target that evenly divides n, else n."""
  if n <= target:
    return n
  t = (target // align) * align
  while t >= align:
    if n % t == 0:
      return t
    t -= align
  return n  # fallback: single full-extent block (always legal)


# ----------------------------- in-kernel helpers -----------------------------
def _erf_poly(x):
  # Abramowitz & Stegun 7.1.26, |abs err| <= 1.5e-7 (~f32 exact).
  # TODO(synk): on v5e (no bf16 VPU) a tanh-approx GELU would move this to the
  # EUP if the VALU becomes the binding slot; kept exact-erf for torch parity.
  a1, a2, a3, a4, a5 = (0.254829592, -0.284496736, 1.421413741,
                        -1.453152027, 1.061405429)
  p = 0.3275911
  sgn = jnp.where(x >= 0.0, 1.0, -1.0)
  ax = jnp.abs(x)
  t = 1.0 / (1.0 + p * ax)
  poly = ((((a5 * t + a4) * t + a3) * t + a2) * t + a1) * t
  return sgn * (1.0 - poly * jnp.exp(-ax * ax))


def _gelu_exact(x):
  # nn.GELU() default = exact (erf-based) GELU.
  return 0.5 * x * (1.0 + _erf_poly(x * 0.7071067811865476))


def _layernorm(y, g, b):
  mu = jnp.mean(y, axis=-1, keepdims=True)
  var = jnp.mean((y - mu) ** 2, axis=-1, keepdims=True)
  return (y - mu) * jax.lax.rsqrt(var + LN_EPS) * g + b


# --------------------------------- kernels -----------------------------------
def _qkv_proj_kernel(x_ref, w_ref, b_ref, o_ref):
  # (tr, E) @ (E, tc) + (1, tc); bf16 MXU inputs, f32 accumulation.
  acc = jnp.dot(x_ref[...].astype(w_ref.dtype), w_ref[...],
                preferred_element_type=jnp.float32)
  o_ref[...] = (acc + b_ref[...]).astype(o_ref.dtype)


def _attn_kernel(qkv_ref, o_ref, *, n_head, scale, compute_dtype):
  # One batch per grid step; qkv block is (1, S, 3E), output block (1, S, E)
  # (lane-dense HBM store).  Heads are processed with 2-D matmuls so no 3-D
  # transposes are needed inside the kernel.
  # TODO(synk): for long S on v7x (64 MiB VMEM) this should be KV-tiled with
  # an online-softmax (flash) accumulator instead of full (S, S) scores.
  qkv = qkv_ref[0]                                   # (S, 3E)
  S, E3 = qkv.shape
  E = E3 // 3
  hd = E // n_head
  for h in range(n_head):
    qh = qkv[:, h * hd:(h + 1) * hd].astype(compute_dtype)            # (S, hd)
    kh = qkv[:, E + h * hd:E + (h + 1) * hd].astype(compute_dtype)
    vh = qkv[:, 2 * E + h * hd:2 * E + (h + 1) * hd].astype(compute_dtype)
    s = jax.lax.dot_general(qh, kh, (((1,), (1,)), ((), ())),
                            preferred_element_type=jnp.float32) * scale
    m = jnp.max(s, axis=-1, keepdims=True)
    e = jnp.exp(s - m)
    p = e * pl.reciprocal(jnp.sum(e, axis=-1, keepdims=True), approx=True)
    oh = jnp.dot(p.astype(compute_dtype), vh,
                 preferred_element_type=jnp.float32)
    o_ref[0, :, h * hd:(h + 1) * hd] = oh.astype(o_ref.dtype)


def _outproj_residual_ln_kernel(x_ref, a_ref, wo_ref, bo_ref, g_ref, b_ref,
                                o_ref):
  proj = jnp.dot(a_ref[...].astype(wo_ref.dtype), wo_ref[...],
                 preferred_element_type=jnp.float32) + bo_ref[...]
  y = x_ref[...] + proj                               # x = x + attn_output
  o_ref[...] = _layernorm(y, g_ref[...], b_ref[...]).astype(o_ref.dtype)


def _mlp_residual_ln_kernel(x_ref, w1_ref, b1_ref, w2_ref, b2_ref, g_ref,
                            b_ref, o_ref, acc_ref):
  # Grid = (row tiles, 4E hidden K-tiles); acc_ref accumulates fc2 partials.
  k = pl.program_id(1)

  @pl.when(k == 0)
  def _():
    acc_ref[...] = jnp.zeros_like(acc_ref)

  cdt = w1_ref.dtype
  h = jnp.dot(x_ref[...].astype(cdt), w1_ref[...],
              preferred_element_type=jnp.float32) + b1_ref[...]
  h = _gelu_exact(h)
  acc_ref[...] += jnp.dot(h.astype(cdt), w2_ref[...],
                          preferred_element_type=jnp.float32)

  @pl.when(k == pl.num_programs(1) - 1)
  def _():
    y = x_ref[...] + acc_ref[...] + b2_ref[...]       # x = x + mlp_output
    o_ref[...] = _layernorm(y, g_ref[...], b_ref[...]).astype(o_ref.dtype)


# --------------------------------- wrapper ------------------------------------
def gpt_block(x, params, *, n_head):
  """x: (S, B, E) float32 -> (S, B, E) float32.  params from prepare_params()."""
  S, B, E = x.shape
  assert E % n_head == 0
  hd = E // n_head
  N = B * S
  f32 = jnp.float32
  cdt = params["in_proj_w"].dtype        # MXU / intermediate dtype (bf16)

  # Single layout change to batch-major; everything downstream works on
  # contiguous per-batch row ranges (no per-head transposes, no q/k/v slices).
  xb = jnp.transpose(x, (1, 0, 2)).reshape(N, E)

  tr = _divisor_tile(N, 256, 8)          # row tile  (multiple of 8 or full)
  tc = _divisor_tile(3 * E, 1024, 128)   # QKV output-column tile
  th = _divisor_tile(4 * E, 1024, 128)   # MLP hidden (K) tile

  mk_params = lambda sem: pltpu.CompilerParams(
      dimension_semantics=sem, vmem_limit_bytes=_VMEM_LIMIT)

  # --- fused QKV projection: (N, E) @ (E, 3E) + b, row x column tiled ---
  qkv = pl.pallas_call(
      _qkv_proj_kernel,
      out_shape=jax.ShapeDtypeStruct((N, 3 * E), cdt),
      grid=(N // tr, (3 * E) // tc),
      in_specs=[pl.BlockSpec((tr, E), lambda i, j: (i, 0)),
                pl.BlockSpec((E, tc), lambda i, j: (0, j)),
                pl.BlockSpec((1, tc), lambda i, j: (0, j))],
      out_specs=pl.BlockSpec((tr, tc), lambda i, j: (i, j)),
      compiler_params=mk_params(("parallel", "parallel")),
  )(xb, params["in_proj_w"], params["in_proj_b"])

  # --- scaled-dot-product attention: grid over batch, all heads per step,
  #     q/k/v read straight from the (B, S, 3E) view of the qkv buffer. ---
  qkv3 = qkv.reshape(B, S, 3 * E)        # free reshape (row-major)
  attn = pl.pallas_call(
      functools.partial(_attn_kernel, n_head=n_head,
                        scale=1.0 / float(hd) ** 0.5, compute_dtype=cdt),
      out_shape=jax.ShapeDtypeStruct((B, S, E), cdt),
      grid=(B,),
      in_specs=[pl.BlockSpec((1, S, 3 * E), lambda b: (b, 0, 0))],
      out_specs=pl.BlockSpec((1, S, E), lambda b: (b, 0, 0)),
      compiler_params=mk_params(("parallel",)),
  )(qkv3)
  attn2 = attn.reshape(N, E)             # free reshape

  # --- attention out-proj + residual + ln_1, row tiled ---
  x_ln1 = pl.pallas_call(
      _outproj_residual_ln_kernel,
      out_shape=jax.ShapeDtypeStruct((N, E), f32),
      grid=(N // tr,),
      in_specs=[pl.BlockSpec((tr, E), lambda i: (i, 0)),
                pl.BlockSpec((tr, E), lambda i: (i, 0)),
                pl.BlockSpec((E, E), lambda i: (0, 0)),
                pl.BlockSpec((1, E), lambda i: (0, 0)),
                pl.BlockSpec((1, E), lambda i: (0, 0)),
                pl.BlockSpec((1, E), lambda i: (0, 0))],
      out_specs=pl.BlockSpec((tr, E), lambda i: (i, 0)),
      compiler_params=mk_params(("parallel",)),
  )(xb, attn2, params["out_proj_w"], params["out_proj_b"],
    params["ln1_w"], params["ln1_b"])

  # --- MLP (fc1 -> GELU -> fc2) + residual + ln_2:
  #     rows "parallel", 4E hidden dim K-tiled ("arbitrary") with an f32
  #     VMEM accumulator; weights streamed per K tile. ---
  out = pl.pallas_call(
      _mlp_residual_ln_kernel,
      out_shape=jax.ShapeDtypeStruct((N, E), f32),
      grid=(N // tr, (4 * E) // th),
      in_specs=[pl.BlockSpec((tr, E), lambda i, k: (i, 0)),
                pl.BlockSpec((E, th), lambda i, k: (0, k)),
                pl.BlockSpec((1, th), lambda i, k: (0, k)),
                pl.BlockSpec((th, E), lambda i, k: (k, 0)),
                pl.BlockSpec((1, E), lambda i, k: (0, 0)),
                pl.BlockSpec((1, E), lambda i, k: (0, 0)),
                pl.BlockSpec((1, E), lambda i, k: (0, 0))],
      out_specs=pl.BlockSpec((tr, E), lambda i, k: (i, 0)),
      scratch_shapes=[pltpu.VMEM((tr, E), jnp.float32)],
      compiler_params=mk_params(("parallel", "arbitrary")),
  )(x_ln1, params["fc1_w"], params["fc1_b"], params["fc2_w"],
    params["fc2_b"], params["ln2_w"], params["ln2_b"])

  # back to the (S, B, E) public layout
  return jnp.transpose(out.reshape(B, S, E), (1, 0, 2))


# ------------------------------- parameters -----------------------------------
def init_params(key, n_embd):
  """Deterministic synthetic parameters, PyTorch weight conventions (out, in)."""
  E = n_embd
  ks = jax.random.split(key, 8)
  w = lambda k, shape, s=0.02: jax.random.normal(k, shape, jnp.float32) * s
  return dict(
      in_proj_w=w(ks[0], (3 * E, E)),
      in_proj_b=w(ks[1], (3 * E,), 0.01),
      out_proj_w=w(ks[2], (E, E)),
      out_proj_b=w(ks[3], (E,), 0.01),
      ln1_w=jnp.ones((E,), jnp.float32),
      ln1_b=jnp.zeros((E,), jnp.float32),
      ln2_w=jnp.ones((E,), jnp.float32),
      ln2_b=jnp.zeros((E,), jnp.float32),
      fc1_w=w(ks[4], (4 * E, E)),
      fc1_b=w(ks[5], (4 * E,), 0.01),
      fc2_w=w(ks[6], (E, 4 * E)),
      fc2_b=w(ks[7], (E,), 0.01),
  )


def prepare_params(raw, matmul_dtype=jnp.bfloat16):
  """One-time, outside-jit prep: pre-transpose weights to (in, out) and cast
  matmul weights to the MXU input dtype.  Biases / LN params stay f32.
  Pass matmul_dtype=jnp.float32 for a bit-closer-to-torch reference path."""
  f32 = jnp.float32
  return dict(
      in_proj_w=raw["in_proj_w"].T.astype(matmul_dtype),     # (E, 3E)
      in_proj_b=raw["in_proj_b"].reshape(1, -1).astype(f32),
      out_proj_w=raw["out_proj_w"].T.astype(matmul_dtype),   # (E, E)
      out_proj_b=raw["out_proj_b"].reshape(1, -1).astype(f32),
      fc1_w=raw["fc1_w"].T.astype(matmul_dtype),             # (E, 4E)
      fc1_b=raw["fc1_b"].reshape(1, -1).astype(f32),
      fc2_w=raw["fc2_w"].T.astype(matmul_dtype),             # (4E, E)
      fc2_b=raw["fc2_b"].reshape(1, -1).astype(f32),
      ln1_w=raw["ln1_w"].reshape(1, -1).astype(f32),
      ln1_b=raw["ln1_b"].reshape(1, -1).astype(f32),
      ln2_w=raw["ln2_w"].reshape(1, -1).astype(f32),
      ln2_b=raw["ln2_b"].reshape(1, -1).astype(f32),
  )


if __name__ == "__main__":
  S, B, E, NH = 8, 2, 32, 4   # seq, batch, n_embd, n_head
  key = jax.random.PRNGKey(0)
  kx, kp = jax.random.split(key)
  x = jax.random.normal(kx, (S, B, E), jnp.float32)
  params = prepare_params(init_params(kp, E))   # pre-transposed / bf16, once

  fwd = jax.jit(functools.partial(gpt_block, n_head=NH))
  y = fwd(x, params)
  jax.block_until_ready(y)
  assert y.shape == (S, B, E) and y.dtype == jnp.float32
  assert bool(jnp.all(jnp.isfinite(y)))
  print("KERNEL_OK")
</pallas_src>

<mosaic_0001>
module attributes {stable_mosaic.version = 11 : i64} {
  func.func @_qkv_proj_kernel(%arg0: i32, %arg1: i32, %arg2: memref<16x32xf32, #tpu.memory_space<vmem>>, %arg3: memref<32x96xbf16, #tpu.memory_space<vmem>>, %arg4: memref<1x96xf32, #tpu.memory_space<vmem>>, %arg5: memref<16x96xbf16, #tpu.memory_space<vmem>>) attributes {dimension_semantics = [#tpu.dimension_semantics<parallel>, #tpu.dimension_semantics<parallel>], iteration_bounds = array<i64: 1, 1>, scalar_prefetch = 0 : i64, scratch_operands = 0 : i64, tpu.core_type = #tpu.core_type<tc>, window_params = [{transform_indices = @transform_0, window_bounds = array<i64: 16, 32>}, {transform_indices = @transform_1, window_bounds = array<i64: 32, 96>}, {transform_indices = @transform_2, window_bounds = array<i64: 1, 96>}, {transform_indices = @transform_3, window_bounds = array<i64: 16, 96>}]} {
    %c0 = arith.constant 0 : index
    %c0_0 = arith.constant 0 : index
    %0 = vector.load %arg2[%c0, %c0_0] : memref<16x32xf32, #tpu.memory_space<vmem>>, vector<16x32xf32>
    %1 = arith.truncf %0 : vector<16x32xf32> to vector<16x32xbf16>
    %c0_1 = arith.constant 0 : index
    %c0_2 = arith.constant 0 : index
    %2 = vector.load %arg3[%c0_1, %c0_2] : memref<32x96xbf16, #tpu.memory_space<vmem>>, vector<32x96xbf16>
    %cst = arith.constant dense<0.000000e+00> : vector<16x96xf32>
    %3 = tpu.matmul %1, %2, %cst {dimension_numbers = #tpu.dot_dimension_numbers<[1], [0], [0], [1], [0, 0, 1, 1], [], []>} : vector<16x32xbf16>, vector<32x96xbf16>, vector<16x96xf32> -> vector<16x96xf32>
    %c0_3 = arith.constant 0 : index
    %c0_4 = arith.constant 0 : index
    %4 = vector.load %arg4[%c0_3, %c0_4] : memref<1x96xf32, #tpu.memory_space<vmem>>, vector<1x96xf32>
    %5 = vector.broadcast %4 : vector<1x96xf32> to vector<16x96xf32>
    %6 = arith.addf %3, %5 : vector<16x96xf32>
    %7 = arith.truncf %6 : vector<16x96xf32> to vector<16x96xbf16>
    %c0_5 = arith.constant 0 : index
    %c0_6 = arith.constant 0 : index
    %8 = vector.load %arg5[%c0_5, %c0_6] : memref<16x96xbf16, #tpu.memory_space<vmem>>, vector<16x96xbf16>
    tpu.vector_store %arg5[%c0_5, %c0_6], %7 {strides = array<i32>} : memref<16x96xbf16, #tpu.memory_space<vmem>>, vector<16x96xbf16>,
    return
  }
  func.func @transform_0(%arg0: i32, %arg1: i32) -> (i32, i32) {
    %c0_i32 = arith.constant 0 : i32
    %c0_i32_0 = arith.constant 0 : i32
    return %arg0, %c0_i32 : i32, i32
  }
  func.func @transform_1(%arg0: i32, %arg1: i32) -> (i32, i32) {
    %c0_i32 = arith.constant 0 : i32
    %c0_i32_0 = arith.constant 0 : i32
    return %c0_i32, %arg1 : i32, i32
  }
  func.func @transform_2(%arg0: i32, %arg1: i32) -> (i32, i32) {
    %c0_i32 = arith.constant 0 : i32
    %c0_i32_0 = arith.constant 0 : i32
    return %c0_i32, %arg1 : i32, i32
  }
  func.func @transform_3(%arg0: i32, %arg1: i32) -> (i32, i32) {
    %c0_i32 = arith.constant 0 : i32
    return %arg0, %arg1 : i32, i32
  }
}

module attributes {stable_mosaic.version = 11 : i64} {
  func.func @_attn_kernel(%arg0: i32, %arg1: memref<1x8x96xbf16, #tpu.memory_space<vmem>>, %arg2: memref<1x8x32xbf16, #tpu.memory_space<vmem>>) attributes {dimension_semantics = [#tpu.dimension_semantics<parallel>], iteration_bounds = array<i64: 2>, scalar_prefetch = 0 : i64, scratch_operands = 0 : i64, tpu.core_type = #tpu.core_type<tc>, window_params = [{transform_indices = @transform_0, window_bounds = array<i64: 1, 8, 96>}, {transform_indices = @transform_1, window_bounds = array<i64: 1, 8, 32>}]} {
    %c0 = arith.constant 0 : index
    %c0_0 = arith.constant 0 : index
    %c0_1 = arith.constant 0 : index
    %0 = vector.load %arg1[%c0, %c0_0, %c0_1] : memref<1x8x96xbf16, #tpu.memory_space<vmem>>, vector<1x8x96xbf16>
    %1 = vector.shape_cast %0 : vector<1x8x96xbf16> to vector<8x96xbf16>
    %2 = vector.extract_strided_slice %1 {offsets = [0, 0], sizes = [8, 8], strides = [1, 1]} : vector<8x96xbf16> to vector<8x8xbf16>
    %3 = vector.extract_strided_slice %1 {offsets = [0, 32], sizes = [8, 8], strides = [1, 1]} : vector<8x96xbf16> to vector<8x8xbf16>
    %4 = vector.extract_strided_slice %1 {offsets = [0, 64], sizes = [8, 8], strides = [1, 1]} : vector<8x96xbf16> to vector<8x8xbf16>
    %cst = arith.constant dense<0.000000e+00> : vector<8x8xf32>
    %5 = tpu.matmul %2, %3, %cst {dimension_numbers = #tpu.dot_dimension_numbers<[1], [1], [0], [0], [0, 0, 1, 0], [], []>} : vector<8x8xbf16>, vector<8x8xbf16>, vector<8x8xf32> -> vector<8x8xf32>
    %cst_2 = arith.constant 0.353553385 : f32
    %6 = vector.broadcast %cst_2 : f32 to vector<8x8xf32>
    %7 = arith.mulf %5, %6 : vector<8x8xf32>
    %cst_3 = arith.constant dense<0xFF800000> : vector<8xf32>
    %8 = vector.multi_reduction <maximumf>, %7, %cst_3 [1] : vector<8x8xf32> to vector<8xf32>
    %9 = vector.shape_cast %8 : vector<8xf32> to vector<8x1xf32>
    %10 = vector.broadcast %9 : vector<8x1xf32> to vector<8x8xf32>
    %11 = arith.subf %7, %10 : vector<8x8xf32>
    %12 = math.exp %11 : vector<8x8xf32>
    %cst_4 = arith.constant dense<0.000000e+00> : vector<8xf32>
    %13 = vector.multi_reduction <add>, %12, %cst_4 [1] : vector<8x8xf32> to vector<8xf32>
    %14 = vector.shape_cast %13 : vector<8xf32> to vector<8x1xf32>
    %15 = tpu.reciprocal %14 {approx = true} : vector<8x1xf32> -> vector<8x1xf32>
    %16 = vector.broadcast %15 : vector<8x1xf32> to vector<8x8xf32>
    %17 = arith.mulf %12, %16 : vector<8x8xf32>
    %18 = arith.truncf %17 : vector<8x8xf32> to vector<8x8xbf16>
    %cst_5 = arith.constant dense<0.000000e+00> : vector<8x8xf32>
    %19 = tpu.matmul %18, %4, %cst_5 {dimension_numbers = #tpu.dot_dimension_numbers<[1], [0], [0], [1], [0, 0, 1, 1], [], []>} : vector<8x8xbf16>, vector<8x8xbf16>, vector<8x8xf32> -> vector<8x8xf32>
    %20 = arith.truncf %19 : vector<8x8xf32> to vector<8x8xbf16>
    %c0_6 = arith.constant 0 : index
    %c0_7 = arith.constant 0 : index
    %c0_8 = arith.constant 0 : index
    %21 = vector.load %arg2[%c0_6, %c0_7, %c0_8] : memref<1x8x32xbf16, #tpu.memory_space<vmem>>, vector<1x8x8xbf16>
    %22 = vector.shape_cast %21 : vector<1x8x8xbf16> to vector<8x8xbf16>
    %23 = vector.shape_cast %20 : vector<8x8xbf16> to vector<1x8x8xbf16>
    tpu.vector_store %arg2[%c0_6, %c0_7, %c0_8], %23 {strides = array<i32>} : memref<1x8x32xbf16, #tpu.memory_space<vmem>>, vector<1x8x8xbf16>,
    %24 = vector.extract_strided_slice %1 {offsets = [0, 8], sizes = [8, 8], strides = [1, 1]} : vector<8x96xbf16> to vector<8x8xbf16>
    %25 = vector.extract_strided_slice %1 {offsets = [0, 40], sizes = [8, 8], strides = [1, 1]} : vector<8x96xbf16> to vector<8x8xbf16>
    %26 = vector.extract_strided_slice %1 {offsets = [0, 72], sizes = [8, 8], strides = [1, 1]} : vector<8x96xbf16> to vector<8x8xbf16>
    %cst_9 = arith.constant dense<0.000000e+00> : vector<8x8xf32>
    %27 = tpu.matmul %24, %25, %cst_9 {dimension_numbers = #tpu.dot_dimension_numbers<[1], [1], [0], [0], [0, 0, 1, 0], [], []>} : vector<8x8xbf16>, vector<8x8xbf16>, vector<8x8xf32> -> vector<8x8xf32>
    %cst_10 = arith.constant 0.353553385 : f32
    %28 = vector.broadcast %cst_10 : f32 to vector<8x8xf32>
    %29 = arith.mulf %27, %28 : vector<8x8xf32>
    %cst_11 = arith.constant dense<0xFF800000> : vector<8xf32>
    %30 = vector.multi_reduction <maximumf>, %29, %cst_11 [1] : vector<8x8xf32> to vector<8xf32>
    %31 = vector.shape_cast %30 : vector<8xf32> to vector<8x1xf32>
    %32 = vector.broadcast %31 : vector<8x1xf32> to vector<8x8xf32>
    %33 = arith.subf %29, %32 : vector<8x8xf32>
    %34 = math.exp %33 : vector<8x8xf32>
    %cst_12 = arith.constant dense<0.000000e+00> : vector<8xf32>
    %35 = vector.multi_reduction <add>, %34, %cst_12 [1] : vector<8x8xf32> to vector<8xf32>
    %36 = vector.shape_cast %35 : vector<8xf32> to vector<8x1xf32>
    %37 = tpu.reciprocal %36 {approx = true} : vector<8x1xf32> -> vector<8x1xf32>
    %38 = vector.broadcast %37 : vector<8x1xf32> to vector<8x8xf32>
    %39 = arith.mulf %34, %38 : vector<8x8xf32>
    %40 = arith.truncf %39 : vector<8x8xf32> to vector<8x8xbf16>
    %cst_13 = arith.constant dense<0.000000e+00> : vector<8x8xf32>
    %41 = tpu.matmul %40, %26, %cst_13 {dimension_numbers = #tpu.dot_dimension_numbers<[1], [0], [0], [1], [0, 0, 1, 1], [], []>} : vector<8x8xbf16>, vector<8x8xbf16>, vector<8x8xf32> -> vector<8x8xf32>
    %42 = arith.truncf %41 : vector<8x8xf32> to vector<8x8xbf16>
    %c0_14 = arith.constant 0 : index
    %c0_15 = arith.constant 0 : index
    %c8 = arith.constant 8 : index
    %43 = vector.load %arg2[%c0_14, %c0_15, %c8] : memref<1x8x32xbf16, #tpu.memory_space<vmem>>, vector<1x8x8xbf16>
    %44 = vector.shape_cast %43 : vector<1x8x8xbf16> to vector<8x8xbf16>
    %45 = vector.shape_cast %42 : vector<8x8xbf16> to vector<1x8x8xbf16>
    tpu.vector_store %arg2[%c0_14, %c0_15, %c8], %45 {strides = array<i32>} : memref<1x8x32xbf16, #tpu.memory_space<vmem>>, vector<1x8x8xbf16>,
    %46 = vector.extract_strided_slice %1 {offsets = [0, 16], sizes = [8, 8], strides = [1, 1]} : vector<8x96xbf16> to vector<8x8xbf16>
    %47 = vector.extract_strided_slice %1 {offsets = [0, 48], sizes = [8, 8], strides = [1, 1]} : vector<8x96xbf16> to vector<8x8xbf16>
    %48 = vector.extract_strided_slice %1 {offsets = [0, 80], sizes = [8, 8], strides = [1, 1]} : vector<8x96xbf16> to vector<8x8xbf16>
    %cst_16 = arith.constant dense<0.000000e+00> : vector<8x8xf32>
    %49 = tpu.matmul %46, %47, %cst_16 {dimension_numbers = #tpu.dot_dimension_numbers<[1], [1], [0], [0], [0, 0, 1, 0], [], []>} : vector<8x8xbf16>, vector<8x8xbf16>, vector<8x8xf32> -> vector<8x8xf32>
    %cst_17 = arith.constant 0.353553385 : f32
    %50 = vector.broadcast %cst_17 : f32 to vector<8x8xf32>
    %51 = arith.mulf %49, %50 : vector<8x8xf32>
    %cst_18 = arith.constant dense<0xFF800000> : vector<8xf32>
    %52 = vector.multi_reduction <maximumf>, %51, %cst_18 [1] : vector<8x8xf32> to vector<8xf32>
    %53 = vector.shape_cast %52 : vector<8xf32> to vector<8x1xf32>
    %54 = vector.broadcast %53 : vector<8x1xf32> to vector<8x8xf32>
    %55 = arith.subf %51, %54 : vector<8x8xf32>
    %56 = math.exp %55 : vector<8x8xf32>
    %cst_19 = arith.constant dense<0.000000e+00> : vector<8xf32>
    %57 = vector.multi_reduction <add>, %56, %cst_19 [1] : vector<8x8xf32> to vector<8xf32>
    %58 = vector.shape_cast %57 : vector<8xf32> to vector<8x1xf32>
    %59 = tpu.reciprocal %58 {approx = true} : vector<8x1xf32> -> vector<8x1xf32>
    %60 = vector.broadcast %59 : vector<8x1xf32> to vector<8x8xf32>
    %61 = arith.mulf %56, %60 : vector<8x8xf32>
    %62 = arith.truncf %61 : vector<8x8xf32> to vector<8x8xbf16>
    %cst_20 = arith.constant dense<0.000000e+00> : vector<8x8xf32>
    %63 = tpu.matmul %62, %48, %cst_20 {dimension_numbers = #tpu.dot_dimension_numbers<[1], [0], [0], [1], [0, 0, 1, 1], [], []>} : vector<8x8xbf16>, vector<8x8xbf16>, vector<8x8xf32> -> vector<8x8xf32>
    %64 = arith.truncf %63 : vector<8x8xf32> to vector<8x8xbf16>
    %c0_21 = arith.constant 0 : index
    %c0_22 = arith.constant 0 : index
    %c16 = arith.constant 16 : index
    %65 = vector.load %arg2[%c0_21, %c0_22, %c16] : memref<1x8x32xbf16, #tpu.memory_space<vmem>>, vector<1x8x8xbf16>
    %66 = vector.shape_cast %65 : vector<1x8x8xbf16> to vector<8x8xbf16>
    %67 = vector.shape_cast %64 : vector<8x8xbf16> to vector<1x8x8xbf16>
    tpu.vector_store %arg2[%c0_21, %c0_22, %c16], %67 {strides = array<i32>} : memref<1x8x32xbf16, #tpu.memory_space<vmem>>, vector<1x8x8xbf16>,
    %68 = vector.extract_strided_slice %1 {offsets = [0, 24], sizes = [8, 8], strides = [1, 1]} : vector<8x96xbf16> to vector<8x8xbf16>
    %69 = vector.extract_strided_slice %1 {offsets = [0, 56], sizes = [8, 8], strides = [1, 1]} : vector<8x96xbf16> to vector<8x8xbf16>
    %70 = vector.extract_strided_slice %1 {offsets = [0, 88], sizes = [8, 8], strides = [1, 1]} : vector<8x96xbf16> to vector<8x8xbf16>
    %cst_23 = arith.constant dense<0.000000e+00> : vector<8x8xf32>
    %71 = tpu.matmul %68, %69, %cst_23 {dimension_numbers = #tpu.dot_dimension_numbers<[1], [1], [0], [0], [0, 0, 1, 0], [], []>} : vector<8x8xbf16>, vector<8x8xbf16>, vector<8x8xf32> -> vector<8x8xf32>
    %cst_24 = arith.constant 0.353553385 : f32
    %72 = vector.broadcast %cst_24 : f32 to vector<8x8xf32>
    %73 = arith.mulf %71, %72 : vector<8x8xf32>
    %cst_25 = arith.constant dense<0xFF800000> : vector<8xf32>
    %74 = vector.multi_reduction <maximumf>, %73, %cst_25 [1] : vector<8x8xf32> to vector<8xf32>
    %75 = vector.shape_cast %74 : vector<8xf32> to vector<8x1xf32>
    %76 = vector.broadcast %75 : vector<8x1xf32> to vector<8x8xf32>
    %77 = arith.subf %73, %76 : vector<8x8xf32>
    %78 = math.exp %77 : vector<8x8xf32>
    %cst_26 = arith.constant dense<0.000000e+00> : vector<8xf32>
    %79 = vector.multi_reduction <add>, %78, %cst_26 [1] : vector<8x8xf32> to vector<8xf32>
    %80 = vector.shape_cast %79 : vector<8xf32> to vector<8x1xf32>
    %81 = tpu.reciprocal %80 {approx = true} : vector<8x1xf32> -> vector<8x1xf32>
    %82 = vector.broadcast %81 : vector<8x1xf32> to vector<8x8xf32>
    %83 = arith.mulf %78, %82 : vector<8x8xf32>
    %84 = arith.truncf %83 : vector<8x8xf32> to vector<8x8xbf16>
    %cst_27 = arith.constant dense<0.000000e+00> : vector<8x8xf32>
    %85 = tpu.matmul %84, %70, %cst_27 {dimension_numbers = #tpu.dot_dimension_numbers<[1], [0], [0], [1], [0, 0, 1, 1], [], []>} : vector<8x8xbf16>, vector<8x8xbf16>, vector<8x8xf32> -> vector<8x8xf32>
    %86 = arith.truncf %85 : vector<8x8xf32> to vector<8x8xbf16>
    %c0_28 = arith.constant 0 : index
    %c0_29 = arith.constant 0 : index
    %c24 = arith.constant 24 : index
    %87 = vector.load %arg2[%c0_28, %c0_29, %c24] : memref<1x8x32xbf16, #tpu.memory_space<vmem>>, vector<1x8x8xbf16>
    %88 = vector.shape_cast %87 : vector<1x8x8xbf16> to vector<8x8xbf16>
    %89 = vector.shape_cast %86 : vector<8x8xbf16> to vector<1x8x8xbf16>
    tpu.vector_store %arg2[%c0_28, %c0_29, %c24], %89 {strides = array<i32>} : memref<1x8x32xbf16, #tpu.memory_space<vmem>>, vector<1x8x8xbf16>,
    return
  }
  func.func @transform_0(%arg0: i32) -> (i32, i32, i32) {
    %c0_i32 = arith.constant 0 : i32
    %c0_i32_0 = arith.constant 0 : i32
    %c0_i32_1 = arith.constant 0 : i32
    return %arg0, %c0_i32, %c0_i32_0 : i32, i32, i32
  }
  func.func @transform_1(%arg0: i32) -> (i32, i32, i32) {
    %c0_i32 = arith.constant 0 : i32
    %c0_i32_0 = arith.constant 0 : i32
    %c0_i32_1 = arith.constant 0 : i32
    return %arg0, %c0_i32, %c0_i32_0 : i32, i32, i32
  }
}

module attributes {stable_mosaic.version = 11 : i64} {
  func.func @_outproj_residual_ln_kernel(%arg0: i32, %arg1: memref<16x32xf32, #tpu.memory_space<vmem>>, %arg2: memref<16x32xbf16, #tpu.memory_space<vmem>>, %arg3: memref<32x32xbf16, #tpu.memory_space<vmem>>, %arg4: memref<1x32xf32, #tpu.memory_space<vmem>>, %arg5: memref<1x32xf32, #tpu.memory_space<vmem>>, %arg6: memref<1x32xf32, #tpu.memory_space<vmem>>, %arg7: memref<16x32xf32, #tpu.memory_space<vmem>>) attributes {dimension_semantics = [#tpu.dimension_semantics<parallel>], iteration_bounds = array<i64: 1>, scalar_prefetch = 0 : i64, scratch_operands = 0 : i64, tpu.core_type = #tpu.core_type<tc>, window_params = [{transform_indices = @transform_0, window_bounds = array<i64: 16, 32>}, {transform_indices = @transform_1, window_bounds = array<i64: 16, 32>}, {pipeline_mode = #tpu.pipeline_mode<synchronous>, transform_indices = @transform_2, window_bounds = array<i64: 32, 32>}, {pipeline_mode = #tpu.pipeline_mode<synchronous>, transform_indices = @transform_3, window_bounds = array<i64: 1, 32>}, {pipeline_mode = #tpu.pipeline_mode<synchronous>, transform_indices = @transform_4, window_bounds = array<i64: 1, 32>}, {pipeline_mode = #tpu.pipeline_mode<synchronous>, transform_indices = @transform_5, window_bounds = array<i64: 1, 32>}, {transform_indices = @transform_6, window_bounds = array<i64: 16, 32>}]} {
    %c0 = arith.constant 0 : index
    %c0_0 = arith.constant 0 : index
    %0 = vector.load %arg2[%c0, %c0_0] : memref<16x32xbf16, #tpu.memory_space<vmem>>, vector<16x32xbf16>
    %c0_1 = arith.constant 0 : index
    %c0_2 = arith.constant 0 : index
    %1 = vector.load %arg3[%c0_1, %c0_2] : memref<32x32xbf16, #tpu.memory_space<vmem>>, vector<32x32xbf16>
    %cst = arith.constant dense<0.000000e+00> : vector<16x32xf32>
    %2 = tpu.matmul %0, %1, %cst {dimension_numbers = #tpu.dot_dimension_numbers<[1], [0], [0], [1], [0, 0, 1, 1], [], []>} : vector<16x32xbf16>, vector<32x32xbf16>, vector<16x32xf32> -> vector<16x32xf32>
    %c0_3 = arith.constant 0 : index
    %c0_4 = arith.constant 0 : index
    %3 = vector.load %arg4[%c0_3, %c0_4] : memref<1x32xf32, #tpu.memory_space<vmem>>, vector<1x32xf32>
    %4 = vector.broadcast %3 : vector<1x32xf32> to vector<16x32xf32>
    %5 = arith.addf %2, %4 : vector<16x32xf32>
    %c0_5 = arith.constant 0 : index
    %c0_6 = arith.constant 0 : index
    %6 = vector.load %arg1[%c0_5, %c0_6] : memref<16x32xf32, #tpu.memory_space<vmem>>, vector<16x32xf32>
    %7 = arith.addf %6, %5 : vector<16x32xf32>
    %c0_7 = arith.constant 0 : index
    %c0_8 = arith.constant 0 : index
    %8 = vector.load %arg5[%c0_7, %c0_8] : memref<1x32xf32, #tpu.memory_space<vmem>>, vector<1x32xf32>
    %c0_9 = arith.constant 0 : index
    %c0_10 = arith.constant 0 : index
    %9 = vector.load %arg6[%c0_9, %c0_10] : memref<1x32xf32, #tpu.memory_space<vmem>>, vector<1x32xf32>
    %cst_11 = arith.constant dense<0.000000e+00> : vector<16xf32>
    %10 = vector.multi_reduction <add>, %7, %cst_11 [1] : vector<16x32xf32> to vector<16xf32>
    %11 = vector.shape_cast %10 : vector<16xf32> to vector<16x1xf32>
    %cst_12 = arith.constant 3.200000e+01 : f32
    %12 = vector.broadcast %cst_12 : f32 to vector<16x1xf32>
    %13 = arith.divf %11, %12 : vector<16x1xf32>
    %14 = vector.broadcast %13 : vector<16x1xf32> to vector<16x32xf32>
    %15 = arith.subf %7, %14 : vector<16x32xf32>
    %16 = arith.mulf %15, %15 : vector<16x32xf32>
    %cst_13 = arith.constant dense<0.000000e+00> : vector<16xf32>
    %17 = vector.multi_reduction <add>, %16, %cst_13 [1] : vector<16x32xf32> to vector<16xf32>
    %18 = vector.shape_cast %17 : vector<16xf32> to vector<16x1xf32>
    %cst_14 = arith.constant 3.200000e+01 : f32
    %19 = vector.broadcast %cst_14 : f32 to vector<16x1xf32>
    %20 = arith.divf %18, %19 : vector<16x1xf32>
    %21 = vector.broadcast %13 : vector<16x1xf32> to vector<16x32xf32>
    %22 = arith.subf %7, %21 : vector<16x32xf32>
    %cst_15 = arith.constant 9.99999974E-6 : f32
    %23 = vector.broadcast %cst_15 : f32 to vector<16x1xf32>
    %24 = arith.addf %20, %23 : vector<16x1xf32>
    %25 = math.rsqrt %24 : vector<16x1xf32>
    %26 = vector.broadcast %25 : vector<16x1xf32> to vector<16x32xf32>
    %27 = arith.mulf %22, %26 : vector<16x32xf32>
    %28 = vector.broadcast %8 : vector<1x32xf32> to vector<16x32xf32>
    %29 = arith.mulf %27, %28 : vector<16x32xf32>
    %30 = vector.broadcast %9 : vector<1x32xf32> to vector<16x32xf32>
    %31 = arith.addf %29, %30 : vector<16x32xf32>
    %c0_16 = arith.constant 0 : index
    %c0_17 = arith.constant 0 : index
    %32 = vector.load %arg7[%c0_16, %c0_17] : memref<16x32xf32, #tpu.memory_space<vmem>>, vector<16x32xf32>
    tpu.vector_store %arg7[%c0_16, %c0_17], %31 {strides = array<i32>} : memref<16x32xf32, #tpu.memory_space<vmem>>, vector<16x32xf32>,
    return
  }
  func.func @transform_0(%arg0: i32) -> (i32, i32) {
    %c0_i32 = arith.constant 0 : i32
    %c0_i32_0 = arith.constant 0 : i32
    return %arg0, %c0_i32 : i32, i32
  }
  func.func @transform_1(%arg0: i32) -> (i32, i32) {
    %c0_i32 = arith.constant 0 : i32
    %c0_i32_0 = arith.constant 0 : i32
    return %arg0, %c0_i32 : i32, i32
  }
  func.func @transform_2(%arg0: i32) -> (i32, i32) {
    %c0_i32 = arith.constant 0 : i32
    %c0_i32_0 = arith.constant 0 : i32
    %c0_i32_1 = arith.constant 0 : i32
    return %c0_i32, %c0_i32_0 : i32, i32
  }
  func.func @transform_3(%arg0: i32) -> (i32, i32) {
    %c0_i32 = arith.constant 0 : i32
    %c0_i32_0 = arith.constant 0 : i32
    %c0_i32_1 = arith.constant 0 : i32
    return %c0_i32, %c0_i32_0 : i32, i32
  }
  func.func @transform_4(%arg0: i32) -> (i32, i32) {
    %c0_i32 = arith.constant 0 : i32
    %c0_i32_0 = arith.constant 0 : i32
    %c0_i32_1 = arith.constant 0 : i32
    return %c0_i32, %c0_i32_0 : i32, i32
  }
  func.func @transform_5(%arg0: i32) -> (i32, i32) {
    %c0_i32 = arith.constant 0 : i32
    %c0_i32_0 = arith.constant 0 : i32
    %c0_i32_1 = arith.constant 0 : i32
    return %c0_i32, %c0_i32_0 : i32, i32
  }
  func.func @transform_6(%arg0: i32) -> (i32, i32) {
    %c0_i32 = arith.constant 0 : i32
    %c0_i32_0 = arith.constant 0 : i32
    return %arg0, %c0_i32 : i32, i32
  }
}

module attributes {stable_mosaic.version = 11 : i64} {
  func.func @_mlp_residual_ln_kernel(%arg0: i32, %arg1: i32, %arg2: memref<16x32xf32, #tpu.memory_space<vmem>>, %arg3: memref<32x128xbf16, #tpu.memory_space<vmem>>, %arg4: memref<1x128xf32, #tpu.memory_space<vmem>>, %arg5: memref<128x32xbf16, #tpu.memory_space<vmem>>, %arg6: memref<1x32xf32, #tpu.memory_space<vmem>>, %arg7: memref<1x32xf32, #tpu.memory_space<vmem>>, %arg8: memref<1x32xf32, #tpu.memory_space<vmem>>, %arg9: memref<16x32xf32, #tpu.memory_space<vmem>>, %arg10: memref<16x32xf32, #tpu.memory_space<vmem>>) attributes {dimension_semantics = [#tpu.dimension_semantics<parallel>, #tpu.dimension_semantics<arbitrary>], iteration_bounds = array<i64: 1, 1>, scalar_prefetch = 0 : i64, scratch_operands = 1 : i64, tpu.core_type = #tpu.core_type<tc>, window_params = [{transform_indices = @transform_0, window_bounds = array<i64: 16, 32>}, {transform_indices = @transform_1, window_bounds = array<i64: 32, 128>}, {transform_indices = @transform_2, window_bounds = array<i64: 1, 128>}, {transform_indices = @transform_3, window_bounds = array<i64: 128, 32>}, {pipeline_mode = #tpu.pipeline_mode<synchronous>, transform_indices = @transform_4, window_bounds = array<i64: 1, 32>}, {pipeline_mode = #tpu.pipeline_mode<synchronous>, transform_indices = @transform_5, window_bounds = array<i64: 1, 32>}, {pipeline_mode = #tpu.pipeline_mode<synchronous>, transform_indices = @transform_6, window_bounds = array<i64: 1, 32>}, {transform_indices = @transform_7, window_bounds = array<i64: 16, 32>}]} {
    %c0_i32 = arith.constant 0 : i32
    %0 = arith.cmpi eq, %arg1, %c0_i32 : i32
    %1 = arith.extui %0 : i1 to i32
    %c0_i32_0 = arith.constant 0 : i32
    %2 = arith.cmpi ne, %1, %c0_i32_0 : i32
    scf.if %2 {
      %cst_31 = arith.constant 0.000000e+00 : f32
      %60 = vector.broadcast %cst_31 : f32 to vector<16x32xf32>
      %c0_32 = arith.constant 0 : index
      %c0_33 = arith.constant 0 : index
      %61 = vector.load %arg10[%c0_32, %c0_33] : memref<16x32xf32, #tpu.memory_space<vmem>>, vector<16x32xf32>
      tpu.vector_store %arg10[%c0_32, %c0_33], %60 {strides = array<i32>} : memref<16x32xf32, #tpu.memory_space<vmem>>, vector<16x32xf32>,
    } else {
    }
    %c0 = arith.constant 0 : index
    %c0_1 = arith.constant 0 : index
    %3 = vector.load %arg2[%c0, %c0_1] : memref<16x32xf32, #tpu.memory_space<vmem>>, vector<16x32xf32>
    %4 = arith.truncf %3 : vector<16x32xf32> to vector<16x32xbf16>
    %c0_2 = arith.constant 0 : index
    %c0_3 = arith.constant 0 : index
    %5 = vector.load %arg3[%c0_2, %c0_3] : memref<32x128xbf16, #tpu.memory_space<vmem>>, vector<32x128xbf16>
    %cst = arith.constant dense<0.000000e+00> : vector<16x128xf32>
    %6 = tpu.matmul %4, %5, %cst {dimension_numbers = #tpu.dot_dimension_numbers<[1], [0], [0], [1], [0, 0, 1, 1], [], []>} : vector<16x32xbf16>, vector<32x128xbf16>, vector<16x128xf32> -> vector<16x128xf32>
    %c0_4 = arith.constant 0 : index
    %c0_5 = arith.constant 0 : index
    %7 = vector.load %arg4[%c0_4, %c0_5] : memref<1x128xf32, #tpu.memory_space<vmem>>, vector<1x128xf32>
    %8 = vector.broadcast %7 : vector<1x128xf32> to vector<16x128xf32>
    %9 = arith.addf %6, %8 : vector<16x128xf32>
    %cst_6 = arith.constant 5.000000e-01 : f32
    %10 = vector.broadcast %cst_6 : f32 to vector<16x128xf32>
    %11 = arith.mulf %10, %9 : vector<16x128xf32>
    %cst_7 = arith.constant 0.707106769 : f32
    %12 = vector.broadcast %cst_7 : f32 to vector<16x128xf32>
    %13 = arith.mulf %9, %12 : vector<16x128xf32>
    %cst_8 = arith.constant 0.000000e+00 : f32
    %14 = vector.broadcast %cst_8 : f32 to vector<16x128xf32>
    %15 = arith.cmpf oge, %13, %14 : vector<16x128xf32>
    %cst_9 = arith.constant 1.000000e+00 : f32
    %cst_10 = arith.constant -1.000000e+00 : f32
    %16 = vector.broadcast %cst_9 : f32 to vector<16x128xf32>
    %17 = vector.broadcast %cst_10 : f32 to vector<16x128xf32>
    %18 = arith.select %15, %16, %17 : vector<16x128xi1>, vector<16x128xf32>
    %19 = math.absf %13 : vector<16x128xf32>
    %cst_11 = arith.constant 0.327591091 : f32
    %20 = vector.broadcast %cst_11 : f32 to vector<16x128xf32>
    %21 = arith.mulf %20, %19 : vector<16x128xf32>
    %cst_12 = arith.constant 1.000000e+00 : f32
    %22 = vector.broadcast %cst_12 : f32 to vector<16x128xf32>
    %23 = arith.addf %22, %21 : vector<16x128xf32>
    %cst_13 = arith.constant 1.000000e+00 : f32
    %24 = vector.broadcast %cst_13 : f32 to vector<16x128xf32>
    %25 = arith.divf %24, %23 : vector<16x128xf32>
    %cst_14 = arith.constant 1.06140542 : f32
    %26 = vector.broadcast %cst_14 : f32 to vector<16x128xf32>
    %27 = arith.mulf %26, %25 : vector<16x128xf32>
    %cst_15 = arith.constant -1.45315206 : f32
    %28 = vector.broadcast %cst_15 : f32 to vector<16x128xf32>
    %29 = arith.addf %27, %28 : vector<16x128xf32>
    %30 = arith.mulf %29, %25 : vector<16x128xf32>
    %cst_16 = arith.constant 1.42141378 : f32
    %31 = vector.broadcast %cst_16 : f32 to vector<16x128xf32>
    %32 = arith.addf %30, %31 : vector<16x128xf32>
    %33 = arith.mulf %32, %25 : vector<16x128xf32>
    %cst_17 = arith.constant -0.284496725 : f32
    %34 = vector.broadcast %cst_17 : f32 to vector<16x128xf32>
    %35 = arith.addf %33, %34 : vector<16x128xf32>
    %36 = arith.mulf %35, %25 : vector<16x128xf32>
    %cst_18 = arith.constant 0.254829586 : f32
    %37 = vector.broadcast %cst_18 : f32 to vector<16x128xf32>
    %38 = arith.addf %36, %37 : vector<16x128xf32>
    %39 = arith.mulf %38, %25 : vector<16x128xf32>
    %cst_19 = arith.constant 0.000000e+00 : f32
    %40 = vector.broadcast %cst_19 : f32 to vector<16x128xf32>
    %41 = arith.subf %40, %19 : vector<16x128xf32>
    %42 = arith.mulf %41, %19 : vector<16x128xf32>
    %43 = math.exp %42 : vector<16x128xf32>
    %44 = arith.mulf %39, %43 : vector<16x128xf32>
    %cst_20 = arith.constant 1.000000e+00 : f32
    %45 = vector.broadcast %cst_20 : f32 to vector<16x128xf32>
    %46 = arith.subf %45, %44 : vector<16x128xf32>
    %47 = arith.mulf %18, %46 : vector<16x128xf32>
    %cst_21 = arith.constant 1.000000e+00 : f32
    %48 = vector.broadcast %cst_21 : f32 to vector<16x128xf32>
    %49 = arith.addf %48, %47 : vector<16x128xf32>
    %50 = arith.mulf %11, %49 : vector<16x128xf32>
    %c0_22 = arith.constant 0 : index
    %c0_23 = arith.constant 0 : index
    %51 = vector.load %arg10[%c0_22, %c0_23] : memref<16x32xf32, #tpu.memory_space<vmem>>, vector<16x32xf32>
    %52 = arith.truncf %50 : vector<16x128xf32> to vector<16x128xbf16>
    %c0_24 = arith.constant 0 : index
    %c0_25 = arith.constant 0 : index
    %53 = vector.load %arg5[%c0_24, %c0_25] : memref<128x32xbf16, #tpu.memory_space<vmem>>, vector<128x32xbf16>
    %cst_26 = arith.constant dense<0.000000e+00> : vector<16x32xf32>
    %54 = tpu.matmul %52, %53, %cst_26 {dimension_numbers = #tpu.dot_dimension_numbers<[1], [0], [0], [1], [0, 0, 1, 1], [], []>} : vector<16x128xbf16>, vector<128x32xbf16>, vector<16x32xf32> -> vector<16x32xf32>
    %55 = arith.addf %51, %54 : vector<16x32xf32>
    %c0_27 = arith.constant 0 : index
    %c0_28 = arith.constant 0 : index
    %56 = vector.load %arg10[%c0_27, %c0_28] : memref<16x32xf32, #tpu.memory_space<vmem>>, vector<16x32xf32>
    tpu.vector_store %arg10[%c0_27, %c0_28], %55 {strides = array<i32>} : memref<16x32xf32, #tpu.memory_space<vmem>>, vector<16x32xf32>,
    %c0_i32_29 = arith.constant 0 : i32
    %57 = arith.cmpi eq, %arg1, %c0_i32_29 : i32
    %58 = arith.extui %57 : i1 to i32
    %c0_i32_30 = arith.constant 0 : i32
    %59 = arith.cmpi ne, %58, %c0_i32_30 : i32
    scf.if %59 {
      %c0_31 = arith.constant 0 : index
      %c0_32 = arith.constant 0 : index
      %60 = vector.load %arg2[%c0_31, %c0_32] : memref<16x32xf32, #tpu.memory_space<vmem>>, vector<16x32xf32>
      %c0_33 = arith.constant 0 : index
      %c0_34 = arith.constant 0 : index
      %61 = vector.load %arg10[%c0_33, %c0_34] : memref<16x32xf32, #tpu.memory_space<vmem>>, vector<16x32xf32>
      %62 = arith.addf %60, %61 : vector<16x32xf32>
      %c0_35 = arith.constant 0 : index
      %c0_36 = arith.constant 0 : index
      %63 = vector.load %arg6[%c0_35, %c0_36] : memref<1x32xf32, #tpu.memory_space<vmem>>, vector<1x32xf32>
      %64 = vector.broadcast %63 : vector<1x32xf32> to vector<16x32xf32>
      %65 = arith.addf %62, %64 : vector<16x32xf32>
      %c0_37 = arith.constant 0 : index
      %c0_38 = arith.constant 0 : index
      %66 = vector.load %arg7[%c0_37, %c0_38] : memref<1x32xf32, #tpu.memory_space<vmem>>, vector<1x32xf32>
      %c0_39 = arith.constant 0 : index
      %c0_40 = arith.constant 0 : index
      %67 = vector.load %arg8[%c0_39, %c0_40] : memref<1x32xf32, #tpu.memory_space<vmem>>, vector<1x32xf32>
      %cst_41 = arith.constant dense<0.000000e+00> : vector<16xf32>
      %68 = vector.multi_reduction <add>, %65, %cst_41 [1] : vector<16x32xf32> to vector<16xf32>
      %69 = vector.shape_cast %68 : vector<16xf32> to vector<16x1xf32>
      %cst_42 = arith.constant 3.200000e+01 : f32
      %70 = vector.broadcast %cst_42 : f32 to vector<16x1xf32>
      %71 = arith.divf %69, %70 : vector<16x1xf32>
      %72 = vector.broadcast %71 : vector<16x1xf32> to vector<16x32xf32>
      %73 = arith.subf %65, %72 : vector<16x32xf32>
      %74 = arith.mulf %73, %73 : vector<16x32xf32>
      %cst_43 = arith.constant dense<0.000000e+00> : vector<16xf32>
      %75 = vector.multi_reduction <add>, %74, %cst_43 [1] : vector<16x32xf32> to vector<16xf32>
      %76 = vector.shape_cast %75 : vector<16xf32> to vector<16x1xf32>
      %cst_44 = arith.constant 3.200000e+01 : f32
      %77 = vector.broadcast %cst_44 : f32 to vector<16x1xf32>
      %78 = arith.divf %76, %77 : vector<16x1xf32>
      %79 = vector.broadcast %71 : vector<16x1xf32> to vector<16x32xf32>
      %80 = arith.subf %65, %79 : vector<16x32xf32>
      %cst_45 = arith.constant 9.99999974E-6 : f32
      %81 = vector.broadcast %cst_45 : f32 to vector<16x1xf32>
      %82 = arith.addf %78, %81 : vector<16x1xf32>
      %83 = math.rsqrt %82 : vector<16x1xf32>
      %84 = vector.broadcast %83 : vector<16x1xf32> to vector<16x32xf32>
      %85 = arith.mulf %80, %84 : vector<16x32xf32>
      %86 = vector.broadcast %66 : vector<1x32xf32> to vector<16x32xf32>
      %87 = arith.mulf %85, %86 : vector<16x32xf32>
      %88 = vector.broadcast %67 : vector<1x32xf32> to vector<16x32xf32>
      %89 = arith.addf %87, %88 : vector<16x32xf32>
      %c0_46 = arith.constant 0 : index
      %c0_47 = arith.constant 0 : index
      %90 = vector.load %arg9[%c0_46, %c0_47] : memref<16x32xf32, #tpu.memory_space<vmem>>, vector<16x32xf32>
      tpu.vector_store %arg9[%c0_46, %c0_47], %89 {strides = array<i32>} : memref<16x32xf32, #tpu.memory_space<vmem>>, vector<16x32xf32>,
    } else {
    }
    return
  }
  func.func @transform_0(%arg0: i32, %arg1: i32) -> (i32, i32) {
    %c0_i32 = arith.constant 0 : i32
    %c0_i32_0 = arith.constant 0 : i32
    return %arg0, %c0_i32 : i32, i32
  }
  func.func @transform_1(%arg0: i32, %arg1: i32) -> (i32, i32) {
    %c0_i32 = arith.constant 0 : i32
    %c0_i32_0 = arith.constant 0 : i32
    return %c0_i32, %arg1 : i32, i32
  }
  func.func @transform_2(%arg0: i32, %arg1: i32) -> (i32, i32) {
    %c0_i32 = arith.constant 0 : i32
    %c0_i32_0 = arith.constant 0 : i32
    return %c0_i32, %arg1 : i32, i32
  }
  func.func @transform_3(%arg0: i32, %arg1: i32) -> (i32, i32) {
    %c0_i32 = arith.constant 0 : i32
    %c0_i32_0 = arith.constant 0 : i32
    return %arg1, %c0_i32 : i32, i32
  }
  func.func @transform_4(%arg0: i32, %arg1: i32) -> (i32, i32) {
    %c0_i32 = arith.constant 0 : i32
    %c0_i32_0 = arith.constant 0 : i32
    %c0_i32_1 = arith.constant 0 : i32
    return %c0_i32, %c0_i32_0 : i32, i32
  }
  func.func @transform_5(%arg0: i32, %arg1: i32) -> (i32, i32) {
    %c0_i32 = arith.constant 0 : i32
    %c0_i32_0 = arith.constant 0 : i32
    %c0_i32_1 = arith.constant 0 : i32
    return %c0_i32, %c0_i32_0 : i32, i32
  }
  func.func @transform_6(%arg0: i32, %arg1: i32) -> (i32, i32) {
    %c0_i32 = arith.constant 0 : i32
    %c0_i32_0 = arith.constant 0 : i32
    %c0_i32_1 = arith.constant 0 : i32
    return %c0_i32, %c0_i32_0 : i32, i32
  }
  func.func @transform_7(%arg0: i32, %arg1: i32) -> (i32, i32) {
    %c0_i32 = arith.constant 0 : i32
    %c0_i32_0 = arith.constant 0 : i32
    return %arg0, %c0_i32 : i32, i32
  }
}

</mosaic_0001>

<bundles_post_ra>
// kernel: gpt_block.5
= control target key start
LH: loop header
LB: loop body
LE: loop exit
PB: predicated region body
PF: predicated region fallthrough
CT: control target
= control target key end

     0   :  { %s509_s6 = smov 0   ;;  %s576_s0 = inlined_call_operand.vmem [shape: bf16[2,8,96], index: 0, kind: input, shape index: {}]   ;;  %s577_s1 = inlined_call_operand.vmem [shape: bf16[2,8,32], index: 1, kind: output, shape index: {}]  }
   0x1 LB: > { %s422_s7 = sadd.s32 4294967295, %s483_s6   ;;  %p426_p0 = scmp.ge.s32.totalorder %s483_s6, 1  ;;  %s483_s6 = sphi %s509_s6, %s11_s6  }
   0x2   : > { %p86_p1 = scmp.lt.s32.totalorder %s483_s6, 3 }
   0x4   : > { %p87_p2 = pnand %p426_p0, %p86_p1 }
   0x5   : > { %p104_p3 = scmp.lt.s32.totalorder (!%p87_p2), %s422_s7, 1  ;;  %s485_s12 = smov (!%p87_p2), 96  }
   0x6   : > { %90 = sbr.rel (%p87_p2) target bundleno = 1196 (0x4ac), region = 24  ;;  %s486_s13 = smov (!%p87_p2), 88  }
   0x7   : > { %s487_s14 = smov (!%p87_p2), 120   ;;  %s488_s15 = smov (!%p87_p2), 64  }
   0x8   : > { %s489_s16 = smov (!%p87_p2), 80   ;;  %s490_s17 = smov (!%p87_p2), 72  }
   0x9   : > { %s491_s18 = smov (!%p87_p2), 112   ;;  %s492_s19 = smov (!%p87_p2), 104  }
   0xa   : > { %s493_s20 = smov (!%p87_p2), 56   ;;  %s494_s21 = smov (!%p87_p2), 40  }
   0xb   : > { %s579_s7 = smov (!%p104_p3, %s422_s7), 1  ;;  %vm119_vm0 = vcmask 64512   ;;  %vm157_vm1 = vcmask 1043456   ;;  %vm175_vm2 = vcmask 60416   ;;  %s495_s25 = smov 48   ;;  %vm239_vm3 = vcmask 126016  }
   0xc   : > { %s427_s8 = sshll.u32 %s579_s7, 2  ;;  %s496_s26 = smov 8   ;;  %vm303_vm4 = vcmask 191616   ;;  %vm367_vm5 = vcmask 257216  }
   0xd   : > { %s107_s11 = scalar_lea.vmem %s576_s0, %s427_s8  ;;  %s556_s24 = scalar_lea.vmem %s577_s1, %s427_s8 }
   0xe   : > { %v113_v0 = vld [vmem:[%s107_s11] sm:$0xf]  ;;  %s497_s27 = smov 16   ;;  %s498_s28 = smov 24  }
   0xf   : > { %v115_v1 = vunpack.c.l.b16 %v113_v0 }
  0x11   : > { %v525_v2 = vpack.c.b16 %v115_v1, %v115_v1 }
  0x13   : > { %117 = vrot.lane.b32.xlu0 %v525_v2, %s485_s12  ;;  %179 = vrot.lane.b32.xlu1 %v525_v2, %s486_s13 }
  0x14   : > { %177 = vrot.lane.b32.xlu2 %v525_v2, %s487_s14 }
  0x1c   : > { %152 = vrot.lane.b32.xlu2 %v525_v2, %s488_s15 }
  0x24   : > { %243 = vrot.lane.b32.xlu2 %v525_v2, %s489_s16 }
  0x2c   : > { %307 = vrot.lane.b32.xlu2 %v525_v2, %s490_s17 }
  0x34   : > { %241 = vrot.lane.b32.xlu2 %v525_v2, %s491_s18 }
  0x3c   : > { %305 = vrot.lane.b32.xlu2 %v525_v2, %s492_s19 }
  0x6e   : > { %v178_v7 = vpop.permute.xlu2 %177 }
  0x76   : > { %v153_v12 = vpop.permute.xlu2 %152 }
  0x77   : > { %v159_v17 = vsel %vm157_vm1, %v153_v12, 0 }
  0x78   : > { %168 = vmatpush.bf16.msra.mxu1 %v159_v17 }
  0x7e   : > { %v244_v13 = vpop.permute.xlu2 %243 }
  0x7f   : > { %v249_v15 = vsel %vm119_vm0, %v244_v13, 0 }
  0x80   : > { %258 = vmatpush.bf16.xpose.msrb.mxu1 %v249_v15 }
  0x85   : > { %v118_v3 = vpop.permute.xlu0 %117  ;;  %v180_v5 = vpop.permute.xlu1 %179 }
  0x86   : > { %v124_v4 = vsel %vm119_vm0, %v118_v3, 0  ;;  %v185_v6 = vsel %vm119_vm0, %v180_v5, 0  ;;  %v308_v14 = vpop.permute.xlu2 %307 }
  0x87   : > { %133 = vmatpush.bf16.xpose.msra.mxu0 %v124_v4  ;;  %194 = vmatpush.bf16.xpose.msra.mxu2 %v185_v6  ;;  %v313_v16 = vsel %vm119_vm0, %v308_v14, 0 }
  0x8e   : > { %429 = vmatmul.msk.bf16.vlgmr.msra.gmra.mxu0 %vm119_vm0, %v113_v0  ;;  %431 = vmatmul.msk.bf16.vlgmr.msra.gmra.mxu2 %vm119_vm0, %v178_v7  ;;  %v242_v18 = vpop.permute.xlu2 %241 }
  0x8f   : > { %322 = vmatpush.bf16.xpose.msrb.mxu0 %v313_v16 }
  0x96   : > { %v306_v19 = vpop.permute.xlu2 %305 }
  0x9e   : > { %435 = vmatmul.msk.bf16.vlgmr.msrb.gmra.mxu0 %vm119_vm0, %v306_v19 }
 0x10b   : > { %v135_v8 = vpop.f32.mrf.mxu0 }
 0x10c   : > { %v139_v9 = vmul.f32 0.35355338, %v135_v8 }
 0x10e   : > { %v140_v10 = vsel %vm119_vm0, %v139_v9, -inf }
 0x10f   : > { %141 = vmax.xlane.f32.xlu0 %v140_v10 }
 0x111   : > { %v196_v20 = vpop.f32.mrf.mxu2 }
 0x112   : > { %v200_v21 = vmul.f32 0.35355338, %v196_v20 }
 0x113   : > { %v137_v11 = vpop.f32.mrf.mxu0 }
 0x114   : > { %v201_v23 = vsel %vm119_vm0, %v200_v21, -inf }
 0x115   : > { %202 = vmax.xlane.f32.xlu2 %v201_v23 }
 0x119   : > { %v198_v26 = vpop.f32.mrf.mxu2 }
 0x11b   : > { %v324_v29 = vpop.f32.mrf.mxu0 }
 0x11c   : > { %v328_v30 = vmul.f32 0.35355338, %v324_v29 }
 0x11e   : > { %v329_v31 = vsel %vm119_vm0, %v328_v30, -inf }
 0x123   : > { %v326_v33 = vpop.f32.mrf.mxu0 }
 0x182   : > { %v142_v22 = vpop.xlane.xlu0 %141 }
 0x183   : > { %v143_v24 = vsub.f32 %v139_v9, %v142_v22 }
 0x185   : > { %v144_v25 = vmul.f32 1.442695, %v143_v24 }
 0x187   : > { %461 = vpow2.f32 %v144_v25 }
 0x188   : > { %v203_v39 = vpop.xlane.xlu2 %202 }
 0x189   : > { %v204_v41 = vsub.f32 %v200_v21, %v203_v39 }
 0x18b   : > { %v205_v42 = vmul.f32 1.442695, %v204_v41 }
 0x18d   : > { %v462_v27 = vpop.eup %461 }
 0x18e   : > { %v146_v28 = vsel %vm119_vm0, %v462_v27, 0.0 }
 0x18f   : > { %147 = vadd.xlane.f32.xlu1 %v146_v28 }
 0x197   : > { %330 = vmax.xlane.f32.xlu1 %v329_v31 }
 0x1b0   : > { %213 = vrot.lane.b32.xlu1 %v525_v2, %s493_s20 }
 0x1b8   : > { %341 = vrot.lane.b32.xlu1 %v525_v2, %s494_s21 }
 0x202   : > { %v148_v32 = vpop.xlane.xlu1 %147 }
 0x203   : > { %463 = vrcp.f32 %v148_v32 }
 0x204   : > { %465 = vpow2.f32 %v205_v42 }
 0x209   : > { %v464_v34 = vpop.eup %463 }
 0x20a   : > { %v150_v35 = vmul.f32 %v464_v34, %v462_v27  ;;  %v331_v43 = vpop.xlane.xlu1 %330  ;;  %v466_v49 = vpop.eup %465 }
 0x20b   : > { %v332_v46 = vsub.f32 %v328_v30, %v331_v43  ;;  %v207_v51 = vsel %vm119_vm0, %v466_v49, 0.0 }
 0x20c   : > { %v151_v36 = vpack.c.bf16 %v150_v35, %v150_v35 }
 0x20d   : > { %v333_v48 = vmul.f32 1.442695, %v332_v46 }
 0x20e   : > { %430 = vmatmul.msk.bf16.vlgmr.msra.gmra.mxu1 %vm119_vm0, %v151_v36 }
 0x20f   : > { %467 = vpow2.f32 %v333_v48 }
 0x215   : > { %v468_v52 = vpop.eup %467 }
 0x216   : > { %v335_v53 = vsel %vm119_vm0, %v468_v52, 0.0 }
 0x21e   : > { %433 = vmatmul.msk.bf16.vlgmr.msrb.gmra.mxu1 %vm119_vm0, %v242_v18 }
 0x222   : > { %v214_v54 = vpop.permute.xlu1 %213 }
 0x223   : > { %v219_v55 = vsel %vm157_vm1, %v214_v54, 0 }
 0x224   : > { %228 = vmatpush.bf16.msra.mxu3 %v219_v55 }
 0x22a   : > { %v342_v56 = vpop.permute.xlu1 %341 }
 0x22b   : > { %v347_v57 = vsel %vm157_vm1, %v342_v56, 0 }
 0x22c   : > { %356 = vmatpush.bf16.msrb.mxu2 %v347_v57 }
 0x28b   : > { %v170_v37 = vpop.f32.mrf.mxu1 }
 0x28c   : > { %v174_v38 = vpack.c.bf16 %v170_v37, %v170_v37 }
 0x28e   : > { %176 = vst.msk [vmem:[%s556_s24] sm:$0xf] %vm175_vm2, %v174_v38 }
 0x293   : > { %v172_v40 = vpop.f32.mrf.mxu1 }
 0x29b   : > { %v260_v44 = vpop.f32.mrf.mxu1 }
 0x29c   : > { %v264_v45 = vmul.f32 0.35355338, %v260_v44 }
 0x29e   : > { %v265_v47 = vsel %vm119_vm0, %v264_v45, -inf }
 0x29f   : > { %266 = vmax.xlane.f32.xlu0 %v265_v47 }
 0x2a3   : > { %v262_v50 = vpop.f32.mrf.mxu1 }
 0x2a7   : > { %208 = vadd.xlane.f32.xlu0 %v207_v51 }
 0x2af   : > { %336 = vadd.xlane.f32.xlu0 %v335_v53 }
 0x312   : > { %v267_v58 = vpop.xlane.xlu0 %266 }
 0x313   : > { %v268_v59 = vsub.f32 %v264_v45, %v267_v58 }
 0x315   : > { %v269_v60 = vmul.f32 1.442695, %v268_v59 }
 0x317   : > { %469 = vpow2.f32 %v269_v60 }
 0x31a   : > { %v209_v61 = vpop.xlane.xlu0 %208 }
 0x31b   : > { %471 = vrcp.f32 %v209_v61 }
 0x31d   : > { %v470_v62 = vpop.eup %469 }
 0x31e   : > { %v271_v63 = vsel %vm119_vm0, %v470_v62, 0.0 }
 0x31f   : > { %272 = vadd.xlane.f32.xlu0 %v271_v63 }
 0x321   : > { %v472_v0 = vpop.eup %471 }
 0x322   : > { %v337_v1 = vpop.xlane.xlu0 %336  ;;  %v211_v3 = vmul.f32 %v472_v0, %v466_v49 }
 0x323   : > { %473 = vrcp.f32 %v337_v1 }
 0x324   : > { %v212_v4 = vpack.c.bf16 %v211_v3, %v211_v3 }
 0x326   : > { %432 = vmatmul.msk.bf16.vlgmr.msra.gmra.mxu3 %vm119_vm0, %v212_v4 }
 0x329   : > { %v474_v5 = vpop.eup %473 }
 0x32a   : > { %v339_v6 = vmul.f32 %v474_v5, %v468_v52 }
 0x32c   : > { %v340_v7 = vpack.c.bf16 %v339_v6, %v339_v6 }
 0x32e   : > { %436 = vmatmul.msk.bf16.vlgmr.msrb.gmra.mxu2 %vm119_vm0, %v340_v7 }
 0x333   : > { %277 = vrot.lane.b32.xlu0 %v525_v2, %s495_s25 }
 0x392   : > { %v273_v8 = vpop.xlane.xlu0 %272 }
 0x393   : > { %475 = vrcp.f32 %v273_v8 }
 0x399   : > { %v476_v9 = vpop.eup %475 }
 0x39a   : > { %v275_v10 = vmul.f32 %v476_v9, %v470_v62 }
 0x39c   : > { %v276_v13 = vpack.c.bf16 %v275_v10, %v275_v10 }
 0x3a5   : > { %v278_v11 = vpop.permute.xlu0 %277 }
 0x3a6   : > { %v283_v12 = vsel %vm157_vm1, %v278_v11, 0 }
 0x3a7   : > { %292 = vmatpush.bf16.msrb.mxu3 %v283_v12 }
 0x3a9   : > { %v230_v14 = vpop.f32.mrf.mxu3 }
 0x3aa   : > { %v234_v15 = vpack.c.bf16 %v230_v14, %v230_v14  ;;  %434 = vmatmul.msk.bf16.vlgmr.msrb.gmra.mxu3 %vm119_vm0, %v276_v13 }
 0x3ac   : > { %236 = vrot.lane.b32.xlu2 %v234_v15, %s496_s26 }
 0x3b1   : > { %v232_v16 = vpop.f32.mrf.mxu3  ;;  %v358_v17 = vpop.f32.mrf.mxu2 }
 0x3b2   : > { %v362_v22 = vpack.c.bf16 %v358_v17, %v358_v17 }
 0x3b9   : > { %v360_v2 = vpop.f32.mrf.mxu2 }
 0x406   : > { %v237_v18 = vpop.permute.xlu2 %236 }
 0x407   : > { %240 = vst.msk [vmem:[%s556_s24] sm:$0xf] %vm239_vm3, %v237_v18 }
 0x42d   : > { %v294_v19 = vpop.f32.mrf.mxu3 }
 0x42e   : > { %v298_v20 = vpack.c.bf16 %v294_v19, %v294_v19 }
 0x430   : > { %300 = vrot.lane.b32.xlu1 %v298_v20, %s497_s27 }
 0x435   : > { %v296_v21 = vpop.f32.mrf.mxu3 }
 0x438   : > { %364 = vrot.lane.b32.xlu1 %v362_v22, %s498_s28 }
 0x4a2   : > { %v301_v23 = vpop.permute.xlu1 %300 }
 0x4a3   : > { %304 = vst.msk [vmem:[%s556_s24] sm:$0xf] %vm303_vm4, %v301_v23 }
 0x4aa   : > { %v365_v24 = vpop.permute.xlu1 %364 }
 0x4ab   : > { %368 = vst.msk [vmem:[%s556_s24] sm:$0xf] %vm367_vm5, %v365_v24 }
 0x4ac PF: > { %s11_s6 = sadd.s32 1, %s483_s6  }
 0x4ad   : > { %p8_p4 = scmp.ge.s32.totalorder %s11_s6, 4  }
 0x4af   :  { %10 = sbr.rel (!%p8_p4) target bundleno = 1 (0x1), region = 54 }

// kernel: gpt_block.6
= control target key start
LH: loop header
LB: loop body
LE: loop exit
PB: predicated region body
PF: predicated region fallthrough
CT: control target
= control target key end

     0   :  { %11 = vsyncpa [#allocation3], 0  ;;  %s214_s24 = smov [#allocation2]   ;;  %s215_s26 = smov 64   ;;  %s287_s0 = inlined_call_operand.vmem [shape: f32[16,32], index: 0, kind: input, shape index: {}]   ;;  %s288_s1 = inlined_call_operand.vmem [shape: bf16[16,32], index: 1, kind: input, shape index: {}]   ;;  %s289_s2 = inlined_call_operand.hbm [shape: bf16[32,32], index: 2, kind: input, shape index: {}]   ;;  %s290_s3 = inlined_call_operand.vmem [shape: f32[1,32], index: 3, kind: input, shape index: {}]   ;;  %s291_s4 = inlined_call_operand.vmem [shape: f32[1,32], index: 4, kind: input, shape index: {}]   ;;  %s292_s5 = inlined_call_operand.vmem [shape: f32[1,32], index: 5, kind: input, shape index: {}]   ;;  %s293_s6 = inlined_call_operand.vmem [shape: f32[16,32], index: 6, kind: output, shape index: {}]  }
   0x1   :  { %s20_s23 = sshll.u32 %s289_s2, 4  ;;  %s22_s25 = sshll.u32 %s214_s24, 4  ;;  %s21_s23 = int_to_ptr.hbm [resolvable:$true] %s20_s23  ;;  %s23_s25 = int_to_ptr.vmem [resolvable:$true] %s22_s25 }
   0x2   :  { %s216_s27 = smov 4  }
   0x3   :  { %28 = dma.hbm_to_vmem [thread:$0]  %s21_s23, 256, %s23_s25, [#allocation3], %s215_s26, %s215_s26, %s216_s27  }
   0x4   :  { %212 = dma.done.wait [#allocation3], 256  }
   0x5   :  { %213 = vsyncadd [#allocation3], 4294967040  ;;  %v174_v0 = vld [vmem:[#allocation2 + $0x8] sm:$0xff]  ;;  %v173_v1 = vld [vmem:[#allocation2] sm:$0xff]  ;;  %vm67_vm0 = vcmask 261120   ;;  %v217_v14 = vmov 32.0  }
   0x6   :  { %77 = vmatpush.bf16.msra.mxu0 %v174_v0  ;;  %v172_v2 = vld [vmem:[%s288_s1] sm:$0xff]  ;;  %v86_v10 = vld [vmem:[%s287_s0 + $0x8] sm:$0xff]  ;;  %182 = vrcp.f32 %v217_v14 }
   0x7   :  { %v179_v3 = vld [vmem:[%s290_s3] ss:$0 sm:$0xff] }
   0x8   :  { %v85_v5 = vld [vmem:[%s287_s0] sm:$0xff] }
   0x9   :  { %v180_v45 = vld [vmem:[%s291_s4] ss:$0 sm:$0xff] }
   0xa   :  { %78 = vmatpush.bf16.msra.mxu0 %v173_v1  ;;  %v181_v48 = vld [vmem:[%s292_s5] ss:$0 sm:$0xff] }
   0xc   :  { %v183_v15 = vpop.eup %182 }
   0xd   :  { %171 = vmatmul.msk.bf16.vlgmr.msra.gmra.mxu0 %vm67_vm0, %v172_v2  ;;  %v98_v16 = vmul.f32 32.0, %v183_v15  ;;  %vm102_vm1 = vweird.f32 %v183_v15 }
   0xf   :  { %v99_v17 = vsub.f32 1.0, %v98_v16 }
  0x11   :  { %v100_v18 = vmul.f32 %v183_v15, %v99_v17 }
  0x13   :  { %v101_v19 = vadd.f32 %v183_v15, %v100_v18 }
  0x15   :  { %v103_v20 = vsel %vm102_vm1, %v183_v15, %v101_v19 }
  0x8a   :  { %v80_v4 = vpop.f32.mrf.mxu0 }
  0x8b   :  { %v81_v6 = vadd.f32 %v179_v3, %v80_v4 }
  0x8d   :  { %v87_v7 = vadd.f32 %v85_v5, %v81_v6 }
  0x8f   :  { %v91_v8 = vsel %vm67_vm0, %v87_v7, 0.0 }
  0x90   :  { %92 = vadd.xlane.f32.xlu0 %v91_v8 }
  0x92   :  { %v82_v9 = vpop.f32.mrf.mxu0 }
  0x93   :  { %v83_v11 = vadd.f32 %v179_v3, %v82_v9 }
  0x95   :  { %v88_v12 = vadd.f32 %v86_v10, %v83_v11 }
  0x97   :  { %v94_v13 = vsel %vm67_vm0, %v88_v12, 0.0 }
  0x98   :  { %95 = vadd.xlane.f32.xlu0 %v94_v13 }
 0x103   :  { %v93_v21 = vpop.xlane.xlu0 %92 }
 0x104   :  { %v104_v22 = vmul.f32 %v103_v20, %v93_v21 }
 0x106   :  { %v106_v23 = vsub.f32 %v87_v7, %v104_v22 }
 0x108   :  { %v108_v24 = vmul.f32 %v106_v23, %v106_v23 }
 0x10a   :  { %v110_v25 = vsel %vm67_vm0, %v108_v24, 0.0 }
 0x10b   :  { %111 = vadd.xlane.f32.xlu1 %v110_v25  ;;  %v96_v26 = vpop.xlane.xlu0 %95 }
 0x10c   :  { %v105_v27 = vmul.f32 %v103_v20, %v96_v26 }
 0x10e   :  { %v107_v28 = vsub.f32 %v88_v12, %v105_v27 }
 0x110   :  { %v109_v29 = vmul.f32 %v107_v28, %v107_v28 }
 0x112   :  { %v113_v30 = vsel %vm67_vm0, %v109_v29, 0.0 }
 0x113   :  { %114 = vadd.xlane.f32.xlu1 %v113_v30 }
 0x17e   :  { %v112_v31 = vpop.xlane.xlu1 %111 }
 0x17f   :  { %v116_v32 = vmul.f32 %v112_v31, %v103_v20 }
 0x181   :  { %v118_v33 = vadd.f32 1e-05, %v116_v32 }
 0x183   :  { %184 = vrsqrt.f32 %v118_v33  ;;  %vm126_vm3 = vweird.f32 %v118_v33 }
 0x186   :  { %v115_v34 = vpop.xlane.xlu1 %114 }
 0x187   :  { %v117_v35 = vmul.f32 %v115_v34, %v103_v20 }
 0x189   :  { %v185_v36 = vpop.eup %184  ;;  %v119_v37 = vadd.f32 1e-05, %v117_v35 }
 0x18a   :  { %v121_v38 = vmul.f32 %v185_v36, %v118_v33  ;;  %vm127_vm2 = vweird.f32 %v185_v36 }
 0x18b   :  { %186 = vrsqrt.f32 %v119_v37  ;;  %vm128_vm4 = vmor %vm126_vm3, %vm127_vm2  ;;  %vm136_vm6 = vweird.f32 %v119_v37 }
 0x18c   :  { %v122_v39 = vmul.f32 %v185_v36, %v121_v38 }
 0x18e   :  { %v123_v40 = vmul.f32 0.5, %v122_v39 }
 0x190   :  { %v124_v41 = vsub.f32 1.5, %v123_v40 }
 0x191   :  { %v187_v42 = vpop.eup %186 }
 0x192   :  { %v125_v43 = vmul.f32 %v185_v36, %v124_v41  ;;  %v131_v44 = vmul.f32 %v187_v42, %v119_v37  ;;  %vm137_vm5 = vweird.f32 %v187_v42 }
 0x193   :  { %vm138_vm7 = vmor %vm136_vm6, %vm137_vm5 }
 0x194   :  { %v129_v46 = vsel %vm128_vm4, %v185_v36, %v125_v43  ;;  %v132_v47 = vmul.f32 %v187_v42, %v131_v44 }
 0x195   :  { %v140_v49 = vmul.f32 %v129_v46, %v106_v23 }
 0x196   :  { %v133_v50 = vmul.f32 0.5, %v132_v47 }
 0x197   :  { %v145_v51 = vmul.f32 %v180_v45, %v140_v49 }
 0x198   :  { %v134_v52 = vsub.f32 1.5, %v133_v50 }
 0x199   :  { %v150_v53 = vadd.f32 %v181_v48, %v145_v51 }
 0x19a   :  { %v135_v54 = vmul.f32 %v187_v42, %v134_v52 }
 0x19b   :  { %152 = vst.msk [vmem:[%s293_s6] sm:$0xff] %vm67_vm0, %v150_v53 }
 0x19c   :  { %v139_v55 = vsel %vm138_vm7, %v187_v42, %v135_v54 }
 0x19d   :  { %v141_v56 = vmul.f32 %v139_v55, %v107_v28 }
 0x19f   :  { %v146_v57 = vmul.f32 %v180_v45, %v141_v56 }
 0x1a1   :  { %v151_v58 = vadd.f32 %v181_v48, %v146_v57 }
 0x1a3   :  { %153 = vst.msk [vmem:[%s293_s6 + $0x8] sm:$0xff] %vm67_vm0, %v151_v58 }
 0x1a4   :  { %158 = vsyncpa [#allocation3], 1 }

// kernel: gpt_block.4
= control target key start
LH: loop header
LB: loop body
LE: loop exit
PB: predicated region body
PF: predicated region fallthrough
CT: control target
= control target key end

     0   :  { %vm38_vm0 = vcmask 261120   ;;  %vm58_vm1 = vcmask 781312   ;;  %s118_s1 = inlined_call_operand.vmem [shape: bf16[32,96], index: 1, kind: input, shape index: {}]   ;;  %s119_s0 = inlined_call_operand.vmem [shape: f32[16,32], index: 0, kind: input, shape index: {}]   ;;  %s120_s2 = inlined_call_operand.vmem [shape: f32[1,96], index: 2, kind: input, shape index: {}]   ;;  %s121_s3 = inlined_call_operand.vmem [shape: bf16[16,96], index: 3, kind: output, shape index: {}]  }
   0x1   :  { %v75_v0 = vld [vmem:[%s118_s1 + $0x8] sm:$0xff]  ;;  %v74_v1 = vld [vmem:[%s118_s1] sm:$0xff] }
   0x2   :  { %48 = vmatpush.bf16.msra.mxu0 %v75_v0  ;;  %v15_v2 = vld [vmem:[%s119_s0] sm:$0xff]  ;;  %v16_v3 = vld [vmem:[%s119_s0 + $0x8] sm:$0xff] }
   0x3   :  { %v17_v4 = vpack.c.bf16 %v16_v3, %v15_v2  ;;  %v76_v5 = vld [vmem:[%s120_s2] ss:$0 sm:$0xff] }
   0x6   :  { %49 = vmatpush.bf16.msra.mxu0 %v74_v1 }
   0x9   :  { %73 = vmatmul.msk.bf16.vlgmr.msra.gmra.mxu0 %vm38_vm0, %v17_v4 }
  0x86   :  { %v51_v6 = vpop.f32.mrf.mxu0 }
  0x87   :  { %v52_v7 = vadd.f32 %v76_v5, %v51_v6 }
  0x89   :  { %v56_v8 = vpack.c.bf16 %v52_v7, %v52_v7 }
  0x8b   :  { %59 = vst.msk [vmem:[%s121_s3] sm:$0xf] %vm58_vm1, %v56_v8 }
  0x8e   :  { %v53_v9 = vpop.f32.mrf.mxu0 }
  0x8f   :  { %v54_v10 = vadd.f32 %v76_v5, %v53_v9 }
  0x91   :  { %v57_v11 = vpack.c.bf16 %v54_v10, %v54_v10 }
  0x93   :  { %60 = vst.msk [vmem:[%s121_s3 + $0x4] sm:$0xf] %vm58_vm1, %v57_v11 }

// kernel: gpt_block.7
= control target key start
LH: loop header
LB: loop body
LE: loop exit
PB: predicated region body
PF: predicated region fallthrough
CT: control target
= control target key end

     0   :  { %vm31_vm0 = vcmask 261120   ;;  %v396_v55 = vmov 0.0   ;;  %s528_s1 = inlined_call_operand.vmem [shape: bf16[32,128], index: 1, kind: input, shape index: {}]   ;;  %s529_s0 = inlined_call_operand.vmem [shape: f32[16,32], index: 0, kind: input, shape index: {}]   ;;  %s530_s2 = inlined_call_operand.vmem [shape: f32[1,128], index: 2, kind: input, shape index: {}]   ;;  %s531_s3 = inlined_call_operand.vmem [shape: bf16[128,32], index: 3, kind: input, shape index: {}]   ;;  %s532_s4 = inlined_call_operand.vmem [shape: f32[1,32], index: 4, kind: input, shape index: {}]   ;;  %s533_s5 = inlined_call_operand.vmem [shape: f32[1,32], index: 5, kind: input, shape index: {}]   ;;  %s534_s6 = inlined_call_operand.vmem [shape: f32[1,32], index: 6, kind: input, shape index: {}]   ;;  %s535_s7 = inlined_call_operand.vmem [shape: f32[16,32], index: 7, kind: output, shape index: {}]  }
   0x1   :  { %v366_v0 = vld [vmem:[%s528_s1 + $0x8] sm:$0xff]  ;;  %v365_v1 = vld [vmem:[%s528_s1] sm:$0xff]  ;;  %v374_v6 = vld [vmem:[%s531_s3 + $0x38] sm:$0xff]  ;;  %32 = vst.msk [vmem:[#allocation2] sm:$0xff] %vm31_vm0, %v396_v55 }
   0x2   :  { %67 = vmatpush.bf16.msra.mxu0 %v366_v0  ;;  %v448_v2 = vld [vmem:[%s529_s0] sm:$0xff]  ;;  %v453_v3 = vld [vmem:[%s529_s0 + $0x8] sm:$0xff]  ;;  %222 = vmatpush.bf16.msra.mxu1 %v374_v6  ;;  %v373_v9 = vld [vmem:[%s531_s3 + $0x30] sm:$0xff]  ;;  %33 = vst.msk [vmem:[#allocation2 + $0x8] sm:$0xff] %vm31_vm0, %v396_v55 }
   0x3   :  { %v36_v4 = vpack.c.bf16 %v453_v3, %v448_v2  ;;  %v378_v5 = vld [vmem:[%s530_s2] ss:$0 sm:$0xff]  ;;  %v372_v12 = vld [vmem:[%s531_s3 + $0x28] sm:$0xff]  ;;  %v370_v19 = vld [vmem:[%s531_s3 + $0x18] sm:$0xff] }
   0x4   :  { %v371_v17 = vld [vmem:[%s531_s3 + $0x20] sm:$0xff]  ;;  %v369_v23 = vld [vmem:[%s531_s3 + $0x10] sm:$0xff]  ;;  %v368_v27 = vld [vmem:[%s531_s3 + $0x8] sm:$0xff] }
   0x5   :  { %v367_v32 = vld [vmem:[%s531_s3] sm:$0xff] }
   0x6   :  { %68 = vmatpush.bf16.msra.mxu0 %v365_v1  ;;  %223 = vmatpush.bf16.msra.mxu1 %v373_v9 }
   0x9   :  { %332 = vmatmul.msk.bf16.vlgmr.msra.gmra.mxu0 %vm31_vm0, %v36_v4 }
   0xa   :  { %224 = vmatpush.bf16.msra.mxu1 %v372_v12 }
   0xe   :  { %225 = vmatpush.bf16.msra.mxu1 %v371_v17 }
  0x12   :  { %226 = vmatpush.bf16.msra.mxu1 %v370_v19 }
  0x16   :  { %227 = vmatpush.bf16.msra.mxu1 %v369_v23 }
  0x1a   :  { %228 = vmatpush.bf16.msra.mxu1 %v368_v27 }
  0x1e   :  { %229 = vmatpush.bf16.msra.mxu1 %v367_v32 }
  0x86   :  { %v70_v7 = vpop.f32.mrf.mxu0 }
  0x87   :  { %v464_v8 = vadd.f32 %v378_v5, %v70_v7 }
  0x89   :  { %v470_v10 = vmul.f32 0.70710677, %v464_v8 }
  0x8b   :  { %v83_v11 = vand.u32 2147483647, %v470_v10  ;;  %vm79_vm9 = vcmp.ge.f32.partialorder %v470_v10, 0.0 }
  0x8d   :  { %v85_v13 = vmul.f32 0.3275911, %v83_v11  ;;  %v137_v38 = vsub.f32 0.0, %v83_v11 }
  0x8e   :  { %v72_v14 = vpop.f32.mrf.mxu0 }
  0x8f   :  { %v87_v15 = vadd.f32 1.0, %v85_v13  ;;  %v476_v16 = vadd.f32 %v378_v5, %v72_v14  ;;  %v139_v45 = vmul.f32 %v137_v38, %v83_v11 }
  0x91   :  { %382 = vrcp.f32 %v87_v15  ;;  %v482_v18 = vmul.f32 0.70710677, %v476_v16  ;;  %v100_v28 = vand.u32 2147483648, %v87_v15  ;;  %v98_v30 = vand.u32 2147483647, %v87_v15 }
  0x92   :  { %vm94_vm2 = vweird.f32 %v87_v15  ;;  %v141_v51 = vmul.f32 1.442695, %v139_v45 }
  0x93   :  { %v84_v20 = vand.u32 2147483647, %v482_v18  ;;  %v101_v33 = vor.u32 1.1754944e-38, %v100_v28  ;;  %vm99_vm4 = vcmp.eq.f32.partialorder %v98_v30, 8.507059e+37  ;;  %vm80_vm10 = vcmp.ge.f32.partialorder %v482_v18, 0.0  ;;  %v155_v30 = vld [vmem:[#allocation2] sm:$0xff] }
  0x94   :  { %v156_v18 = vld [vmem:[#allocation2 + $0x8] sm:$0xff] }
  0x95   :  { %v86_v21 = vmul.f32 0.3275911, %v84_v20  ;;  %v138_v52 = vsub.f32 0.0, %v84_v20 }
  0x97   :  { %v383_v22 = vpop.eup %382  ;;  %v88_v25 = vadd.f32 1.0, %v86_v21  ;;  %v140_v59 = vmul.f32 %v138_v52, %v84_v20 }
  0x98   :  { %v90_v24 = vmul.f32 %v383_v22, %v87_v15  ;;  %vm95_vm1 = vweird.f32 %v383_v22  ;;  %v397_v15 = vmov -1.0  }
  0x99   :  { %384 = vrcp.f32 %v88_v25  ;;  %vm96_vm3 = vmor %vm94_vm2, %vm95_vm1  ;;  %v115_v41 = vand.u32 2147483648, %v88_v25  ;;  %v113_v44 = vand.u32 2147483647, %v88_v25  ;;  %vm109_vm6 = vweird.f32 %v88_v25 }
  0x9a   :  { %v91_v26 = vsub.f32 1.0, %v90_v24  ;;  %386 = vpow2.f32 %v141_v51  ;;  %v143_v0 = vmul.f32 1.442695, %v140_v59  ;;  %v81_v17 = vsel %vm79_vm9, 1.0, %v397_v15 }
  0x9b   :  { %v116_v48 = vor.u32 1.1754944e-38, %v115_v41  ;;  %vm114_vm8 = vcmp.eq.f32.partialorder %v113_v44, 8.507059e+37 }
  0x9c   :  { %v92_v29 = vmul.f32 %v383_v22, %v91_v26  ;;  %388 = vpow2.f32 %v143_v0  ;;  %v76_v26 = vmul.f32 0.5, %v476_v16 }
  0x9e   :  { %v93_v31 = vadd.f32 %v383_v22, %v92_v29 }
  0x9f   :  { %v385_v34 = vpop.eup %384 }
  0xa0   :  { %v97_v35 = vsel %vm96_vm3, %v383_v22, %v93_v31  ;;  %v105_v36 = vmul.f32 %v385_v34, %v88_v25  ;;  %vm110_vm5 = vweird.f32 %v385_v34  ;;  %v387_v5 = vpop.eup %386  ;;  %v82_v22 = vsel %vm80_vm10, 1.0, %v397_v15 }
  0xa1   :  { %v102_v37 = vsel %vm99_vm4, %v101_v33, %v97_v35  ;;  %vm111_vm7 = vmor %vm109_vm6, %vm110_vm5  ;;  %v75_v25 = vmul.f32 0.5, %v464_v8  ;;  %v379_v35 = vld [vmem:[%s532_s4] ss:$0 sm:$0xff] }
  0xa2   :  { %v119_v39 = vmul.f32 1.0614054, %v102_v37  ;;  %v106_v40 = vsub.f32 1.0, %v105_v36  ;;  %v389_v14 = vpop.eup %388 }
  0xa4   :  { %v121_v42 = vadd.f32 -1.4531521, %v119_v39  ;;  %v107_v43 = vmul.f32 %v385_v34, %v106_v40 }
  0xa6   :  { %v123_v46 = vmul.f32 %v121_v42, %v102_v37  ;;  %v108_v47 = vadd.f32 %v385_v34, %v107_v43  ;;  %v398_v42 = vmov 32.0  }
  0xa7   :  { %390 = vrcp.f32 %v398_v42 }
  0xa8   :  { %v125_v49 = vadd.f32 1.4214138, %v123_v46  ;;  %v112_v50 = vsel %vm111_vm7, %v385_v34, %v108_v47 }
  0xa9   :  { %v117_v53 = vsel %vm114_vm8, %v116_v48, %v112_v50 }
  0xaa   :  { %v127_v54 = vmul.f32 %v125_v49, %v102_v37  ;;  %v120_v56 = vmul.f32 1.0614054, %v117_v53 }
  0xac   :  { %v129_v57 = vadd.f32 -0.28449672, %v127_v54  ;;  %v122_v58 = vadd.f32 -1.4531521, %v120_v56 }
  0xad   :  { %v391_v43 = vpop.eup %390 }
  0xae   :  { %v131_v60 = vmul.f32 %v129_v57, %v102_v37  ;;  %v124_v61 = vmul.f32 %v122_v58, %v117_v53  ;;  %v264_v44 = vmul.f32 32.0, %v391_v43  ;;  %vm268_vm11 = vweird.f32 %v391_v43 }
  0xb0   :  { %v133_v62 = vadd.f32 0.2548296, %v131_v60  ;;  %v126_v63 = vadd.f32 1.4214138, %v124_v61  ;;  %v265_v45 = vsub.f32 1.0, %v264_v44 }
  0xb2   :  { %v135_v1 = vmul.f32 %v133_v62, %v102_v37  ;;  %v128_v4 = vmul.f32 %v126_v63, %v117_v53  ;;  %v266_v46 = vmul.f32 %v391_v43, %v265_v45 }
  0xb4   :  { %v130_v6 = vadd.f32 -0.28449672, %v128_v4  ;;  %v145_v7 = vmul.f32 %v387_v5, %v135_v1  ;;  %v267_v47 = vadd.f32 %v391_v43, %v266_v46 }
  0xb6   :  { %v132_v9 = vmul.f32 %v130_v6, %v117_v53  ;;  %v147_v12 = vsub.f32 1.0, %v145_v7 }
  0xb8   :  { %v134_v11 = vadd.f32 0.2548296, %v132_v9  ;;  %v149_v20 = vmul.f32 %v147_v12, %v81_v17 }
  0xba   :  { %v136_v13 = vmul.f32 %v134_v11, %v117_v53  ;;  %v151_v24 = vadd.f32 1.0, %v149_v20  ;;  %v380_v11 = vld [vmem:[%s533_s5] ss:$0 sm:$0xff] }
  0xbc   :  { %v146_v19 = vmul.f32 %v389_v14, %v136_v13  ;;  %v153_v10 = vmul.f32 %v151_v24, %v75_v25  ;;  %v381_v14 = vld [vmem:[%s534_s6] ss:$0 sm:$0xff] }
  0xbe   :  { %v148_v21 = vsub.f32 1.0, %v146_v19 }
  0xc0   :  { %v150_v23 = vmul.f32 %v148_v21, %v82_v22 }
  0xc2   :  { %v152_v27 = vadd.f32 1.0, %v150_v23 }
  0xc4   :  { %v154_v28 = vmul.f32 %v152_v27, %v76_v26 }
  0xc6   :  { %v157_v29 = vpack.c.bf16 %v154_v28, %v153_v10 }
  0xc8   :  { %230 = vmatmul.bf16.vlgmr.msra.gmra.mxu1 %v157_v29 }
 0x145   :  { %v231_v31 = vpop.f32.mrf.mxu1 }
 0x146   :  { %v236_v32 = vadd.f32 %v231_v31, %v155_v30 }
 0x148   :  { %238 = vst.msk [vmem:[#allocation2] sm:$0xff] %vm31_vm0, %v236_v32 }
 0x14d   :  { %v233_v33 = vpop.f32.mrf.mxu1 }
 0x14e   :  { %v237_v34 = vadd.f32 %v233_v33, %v156_v18 }
 0x14f   :  { %v245_v8 = vld [vmem:[#allocation2] sm:$0xff] }
 0x150   :  { %239 = vst.msk [vmem:[#allocation2 + $0x8] sm:$0xff] %vm31_vm0, %v237_v34  ;;  %v247_v16 = vadd.f32 %v245_v8, %v448_v2  ;;  %v269_v2 = vsel %vm268_vm11, %v391_v43, %v267_v47 }
 0x152   :  { %v253_v36 = vadd.f32 %v379_v35, %v247_v16 }
 0x154   :  { %v257_v37 = vsel %vm31_vm0, %v253_v36, 0.0 }
 0x155   :  { %258 = vadd.xlane.f32.xlu0 %v257_v37 }
 0x157   :  { %v246_v38 = vld [vmem:[#allocation2 + $0x8] sm:$0xff] }
 0x158   :  { %v248_v39 = vadd.f32 %v246_v38, %v453_v3 }
 0x15a   :  { %v254_v40 = vadd.f32 %v379_v35, %v248_v39 }
 0x15c   :  { %v260_v41 = vsel %vm31_vm0, %v254_v40, 0.0 }
 0x15d   :  { %261 = vadd.xlane.f32.xlu0 %v260_v41 }
 0x1c8   :  { %v259_v48 = vpop.xlane.xlu0 %258 }
 0x1c9   :  { %v270_v49 = vmul.f32 %v269_v2, %v259_v48 }
 0x1cb   :  { %v272_v50 = vsub.f32 %v253_v36, %v270_v49 }
 0x1cd   :  { %v274_v51 = vmul.f32 %v272_v50, %v272_v50 }
 0x1cf   :  { %v276_v52 = vsel %vm31_vm0, %v274_v51, 0.0 }
 0x1d0   :  { %277 = vadd.xlane.f32.xlu1 %v276_v52  ;;  %v262_v3 = vpop.xlane.xlu0 %261 }
 0x1d1   :  { %v271_v53 = vmul.f32 %v269_v2, %v262_v3 }
 0x1d3   :  { %v273_v54 = vsub.f32 %v254_v40, %v271_v53 }
 0x1d5   :  { %v275_v55 = vmul.f32 %v273_v54, %v273_v54 }
 0x1d7   :  { %v279_v56 = vsel %vm31_vm0, %v275_v55, 0.0 }
 0x1d8   :  { %280 = vadd.xlane.f32.xlu1 %v279_v56 }
 0x243   :  { %v278_v57 = vpop.xlane.xlu1 %277 }
 0x244   :  { %v282_v58 = vmul.f32 %v278_v57, %v269_v2 }
 0x246   :  { %v284_v59 = vadd.f32 1e-05, %v282_v58 }
 0x248   :  { %392 = vrsqrt.f32 %v284_v59  ;;  %vm292_vm13 = vweird.f32 %v284_v59 }
 0x24b   :  { %v281_v60 = vpop.xlane.xlu1 %280 }
 0x24c   :  { %v283_v61 = vmul.f32 %v281_v60, %v269_v2 }
 0x24e   :  { %v393_v62 = vpop.eup %392  ;;  %v285_v63 = vadd.f32 1e-05, %v283_v61 }
 0x24f   :  { %v287_v0 = vmul.f32 %v393_v62, %v284_v59  ;;  %vm293_vm12 = vweird.f32 %v393_v62 }
 0x250   :  { %394 = vrsqrt.f32 %v285_v63  ;;  %vm294_vm14 = vmor %vm292_vm13, %vm293_vm12  ;;  %vm302_vm1 = vweird.f32 %v285_v63 }
 0x251   :  { %v288_v1 = vmul.f32 %v393_v62, %v287_v0 }
 0x253   :  { %v289_v4 = vmul.f32 0.5, %v288_v1 }
 0x255   :  { %v290_v5 = vsub.f32 1.5, %v289_v4 }
 0x256   :  { %v395_v6 = vpop.eup %394 }
 0x257   :  { %v291_v7 = vmul.f32 %v393_v62, %v290_v5  ;;  %v297_v9 = vmul.f32 %v395_v6, %v285_v63  ;;  %vm303_vm15 = vweird.f32 %v395_v6 }
 0x258   :  { %vm304_vm2 = vmor %vm302_vm1, %vm303_vm15 }
 0x259   :  { %v295_v12 = vsel %vm294_vm14, %v393_v62, %v291_v7  ;;  %v298_v13 = vmul.f32 %v395_v6, %v297_v9 }
 0x25a   :  { %v306_v15 = vmul.f32 %v295_v12, %v272_v50 }
 0x25b   :  { %v299_v17 = vmul.f32 0.5, %v298_v13 }
 0x25c   :  { %v311_v19 = vmul.f32 %v380_v11, %v306_v15 }
 0x25d   :  { %v300_v20 = vsub.f32 1.5, %v299_v17 }
 0x25e   :  { %v316_v21 = vadd.f32 %v381_v14, %v311_v19 }
 0x25f   :  { %v301_v22 = vmul.f32 %v395_v6, %v300_v20 }
 0x260   :  { %318 = vst.msk [vmem:[%s535_s7] sm:$0xff] %vm31_vm0, %v316_v21 }
 0x261   :  { %v305_v23 = vsel %vm304_vm2, %v395_v6, %v301_v22 }
 0x262   :  { %v307_v24 = vmul.f32 %v305_v23, %v273_v54 }
 0x264   :  { %v312_v25 = vmul.f32 %v380_v11, %v307_v24 }
 0x266   :  { %v317_v26 = vadd.f32 %v381_v14, %v312_v25 }
 0x268   :  { %319 = vst.msk [vmem:[%s535_s7 + $0x8] sm:$0xff] %vm31_vm0, %v317_v26 }

</bundles_post_ra>
